<compile_context>
chip_gen: v7x
topology: tpu7x:2x2x1
jax: 0.10.0
libtpu: 0.0.40
codegen_flags: <defaults>
</compile_context>

<pallas_src>
import functools

import jax
import jax.numpy as jnp
from jax.experimental import pallas as pl
from jax.experimental.pallas import tpu as pltpu

LN_EPS = 1e-5       # nn.LayerNorm default eps
NORM_EPS = 1e-12    # F.normalize default eps


# ----------------------------------------------------------------------------
# Single fused kernel: one-hot gathers -> image MLP -> 2x conditional -> comp
# -> normalized dot-product score.  Everything stays in VMEM/vregs.
# ----------------------------------------------------------------------------
def _fused_kernel(idx_ref, img_ref, tbl_ref, wh_ref, ww_ref, we_ref,
                  vimg_ref, vpair_ref, score_ref, *, n_pairs):
    f32 = jnp.float32
    V = img_ref.shape[1]           # vemb_dim
    H, E = we_ref.shape            # hid_dim, emb_dim
    W, K = tbl_ref.shape           # wemb_dim, n_attrs + n_objs
    P_pad = idx_ref.shape[1]

    # ---- pair-branch embedding gather (transposed: pairs on lanes) ----------
    # Exact one-hot @ table on the MXU; fine while the tables are tiny.
    # TODO(synk): switch to a scalar-prefetch / DMA gather once n_attrs+n_objs
    # reaches production size (one-hot is O(P*K) VMEM + a K-wide matmul).
    iota_k = jax.lax.broadcasted_iota(jnp.int32, (K, P_pad), 0)
    attr_oh = (iota_k == idx_ref[0:1, :]).astype(f32)            # (K, P_pad)
    obj_oh = (iota_k == idx_ref[1:2, :]).astype(f32)             # (K, P_pad)
    tbl = tbl_ref[...]                                           # (W, K)
    a_t = jnp.dot(tbl, attr_oh, preferred_element_type=f32)      # (W, P_pad)
    o_t = jnp.dot(tbl, obj_oh, preferred_element_type=f32)       # (W, P_pad)

    # ---- image_embedder: (Linear -> LN -> ReLU) x2 -> Linear -> ReLU --------
    # Dropout layers are identity in eval mode.
    def ln_rows(h, g, b):
        n = h.shape[-1]
        s1 = jnp.sum(h, axis=-1, keepdims=True)
        s2 = jnp.sum(h * h, axis=-1, keepdims=True)      # independent reduces
        mu = s1 * (1.0 / n)
        var = s2 * (1.0 / n) - mu * mu
        return (h - mu) * jax.lax.rsqrt(var + LN_EPS) * g + b

    ie_w1 = wh_ref[0:V, :]
    ie_w2 = wh_ref[V:V + H, :]
    h = jnp.dot(img_ref[...], ie_w1, preferred_element_type=f32) + vimg_ref[0:1, 0:H]
    h = jnp.maximum(ln_rows(h, vimg_ref[1:2, 0:H], vimg_ref[2:3, 0:H]), 0.0)
    h = jnp.dot(h, ie_w2, preferred_element_type=f32) + vimg_ref[3:4, 0:H]
    h = jnp.maximum(ln_rows(h, vimg_ref[4:5, 0:H], vimg_ref[5:6, 0:H]), 0.0)
    img_feats = jnp.maximum(
        jnp.dot(h, we_ref[...], preferred_element_type=f32) + vimg_ref[6:7, 0:E],
        0.0)                                                     # (B_pad, E)

    # ---- compnet, transposed (features x pairs) ------------------------------
    def ln_cols(h, g, b):
        n = h.shape[0]
        s1 = jnp.sum(h, axis=0, keepdims=True)
        s2 = jnp.sum(h * h, axis=0, keepdims=True)
        mu = s1 * (1.0 / n)
        var = s2 * (1.0 / n) - mu * mu
        return (h - mu) * jax.lax.rsqrt(var + LN_EPS) * g + b

    def conditional_t(x_t, y_t, w1x, w1y, b1, g, be, w2, b2):
        # sigmoid(Lin2(ReLU(LN(Lin1(cat[x,y]))))) * x, with the concat replaced
        # by two accumulating matmuls against pre-split weight halves.
        hh = (jnp.dot(w1x, x_t, preferred_element_type=f32)
              + jnp.dot(w1y, y_t, preferred_element_type=f32) + b1)
        hh = jnp.maximum(ln_cols(hh, g, be), 0.0)
        # Dropout(p=0.5) is identity in eval mode.
        yy = jnp.dot(w2, hh, preferred_element_type=f32) + b2
        return jax.nn.sigmoid(yy) * x_t

    a_w1a = ww_ref[0:H, :]
    a_w1o = ww_ref[H:2 * H, :]
    o_w1a = ww_ref[2 * H:3 * H, :]
    o_w1o = ww_ref[3 * H:4 * H, :]
    c_w1a = ww_ref[4 * H:5 * H, :]
    c_w1o = ww_ref[5 * H:6 * H, :]
    a_w2 = wh_ref[V + H:V + H + W, :]
    o_w2 = wh_ref[V + H + W:V + H + 2 * W, :]
    c_w2 = wh_ref[V + H + 2 * W:V + H + 2 * W + E, :]

    xa_t = conditional_t(a_t, o_t, a_w1a, a_w1o,
                         vpair_ref[0:H, 0:1], vpair_ref[0:H, 1:2],
                         vpair_ref[0:H, 2:3], a_w2, vpair_ref[0:W, 7:8])
    xo_t = conditional_t(o_t, a_t, o_w1a, o_w1o,
                         vpair_ref[0:H, 3:4], vpair_ref[0:H, 4:5],
                         vpair_ref[0:H, 5:6], o_w2, vpair_ref[0:W, 8:9])

    hc = jnp.maximum(jnp.dot(c_w1a, xa_t, preferred_element_type=f32)
                     + jnp.dot(c_w1o, xo_t, preferred_element_type=f32)
                     + vpair_ref[0:H, 6:7], 0.0)                 # (H, P_pad)
    pe_t = (jnp.dot(c_w2, hc, preferred_element_type=f32)
            + vpair_ref[0:E, 9:10])                              # (E, P_pad)

    # Zero the padded pair columns so they don't pollute the normalization.
    lane = jax.lax.broadcasted_iota(jnp.int32, (1, P_pad), 1)
    pe_t = jnp.where(lane < n_pairs, pe_t, 0.0)

    # score = img_feats @ F.normalize(pe.T, dim=1): per emb-dim L2 over pairs.
    sumsq = jnp.sum(pe_t * pe_t, axis=1, keepdims=True)          # (E, 1)
    inv_norm = jax.lax.rsqrt(jnp.maximum(sumsq, NORM_EPS * NORM_EPS))   # EUP
    score_ref[...] = jnp.dot(img_feats, pe_t * inv_norm,
                             preferred_element_type=f32)         # (B_pad, P_pad)


# ----------------------------------------------------------------------------
# One-time parameter packing (pre-transpose / pre-split / stack); free at init.
# ----------------------------------------------------------------------------
def pack_params(params, val_attr_idx, val_obj_idx):
    ie = params["image_embedder"]
    ae = params["attr_embdr"]
    oe = params["obj_embdr"]
    co = params["comp"]
    attr_tbl = params["attr_embds"]
    obj_tbl = params["obj_embds"]

    n_attrs, W = attr_tbl.shape
    V, H = ie["w1"].shape
    E = ie["w3"].shape[1]

    # Combined, transposed embedding table: (W, n_attrs + n_objs).
    tbl = jnp.concatenate([attr_tbl, obj_tbl], axis=0).T

    # All matrices with H columns, stacked along rows.
    wh = jnp.concatenate([ie["w1"], ie["w2"],
                          ae["w2"].T, oe["w2"].T, co["w2"].T], axis=0)
    # Layer-1 halves (transposed) of the two conditional modules + comp.
    ww = jnp.concatenate([ae["w1"][:W].T, ae["w1"][W:].T,
                          oe["w1"][:W].T, oe["w1"][W:].T,
                          co["w1"][:W].T, co["w1"][W:].T], axis=0)
    we = ie["w3"]                                                 # (H, E)

    # Image-branch row vectors, stacked on sublanes.
    dv = max(H, E)

    def row(v):
        r = jnp.zeros((1, dv), jnp.float32)
        return r.at[0, :v.shape[-1]].set(v.reshape(-1))

    vimg = jnp.concatenate([row(ie["b1"]), row(ie["g1"]), row(ie["be1"]),
                            row(ie["b2"]), row(ie["g2"]), row(ie["be2"]),
                            row(ie["b3"])], axis=0)               # (7, dv)

    # Pair-branch column vectors (transposed orientation), stacked on lanes.
    dp = max(H, W, E)

    def col(v):
        c = jnp.zeros((dp, 1), jnp.float32)
        return c.at[:v.shape[-1], 0].set(v.reshape(-1))

    vpair = jnp.concatenate([col(ae["b1"]), col(ae["gamma"]), col(ae["beta"]),
                             col(oe["b1"]), col(oe["gamma"]), col(oe["beta"]),
                             col(co["b1"]),
                             col(ae["b2"]), col(oe["b2"]), col(co["b2"])],
                            axis=1)                               # (dp, 10)

    # Index metadata: lane-dense (2, P_pad), obj indices pre-offset by n_attrs.
    P = val_attr_idx.shape[0]
    P_pad = ((P + 127) // 128) * 128
    ai = jnp.zeros((P_pad,), jnp.int32).at[:P].set(val_attr_idx.astype(jnp.int32))
    oi = jnp.zeros((P_pad,), jnp.int32).at[:P].set(
        val_obj_idx.astype(jnp.int32) + n_attrs)
    idx = jnp.stack([ai, oi], axis=0)

    return {"idx": idx, "tbl": tbl, "wh": wh, "ww": ww, "we": we,
            "vimg": vimg, "vpair": vpair}


# ----------------------------------------------------------------------------
# Conditional.val_forward_dotpr (eval mode): one jit, one pallas_call.
# ----------------------------------------------------------------------------
@functools.partial(jax.jit, static_argnames=("n_pairs",))
def conditional_val_forward(packed, img, *, n_pairs):
    B, V = img.shape
    B_pad = ((B + 7) // 8) * 8
    img_p = jnp.zeros((B_pad, V), jnp.float32).at[:B].set(img.astype(jnp.float32))

    idx = packed["idx"]
    tbl, wh, ww, we = packed["tbl"], packed["wh"], packed["ww"], packed["we"]
    vimg, vpair = packed["vimg"], packed["vpair"]
    P_pad = idx.shape[1]
    H, E = we.shape
    W, K = tbl.shape

    in_bytes = sum(int(x.size) * x.dtype.itemsize
                   for x in (idx, img_p, tbl, wh, ww, we, vimg, vpair))
    out_bytes = B_pad * P_pad * 4
    flops = 2 * (B_pad * V * H + B_pad * H * H + B_pad * H * E      # image MLP
                 + 2 * W * K * P_pad                                # gathers
                 + 2 * (2 * H * W * P_pad + W * H * P_pad)          # conditionals
                 + 2 * H * W * P_pad + E * H * P_pad                # comp MLP
                 + B_pad * E * P_pad)                               # score
    cost = pl.CostEstimate(flops=flops, transcendentals=2 * W * P_pad,
                           bytes_accessed=in_bytes + out_bytes)
    vmem_limit = int(min(64 * 1024 * 1024,
                         max(32 * 1024 * 1024, 8 * (in_bytes + out_bytes))))

    # TODO(synk): at production sizes (large P / wide dims on v7x) tile the
    # pair axis with a grid marked "parallel" and cast MXU inputs to bf16.
    score_pad = pl.pallas_call(
        functools.partial(_fused_kernel, n_pairs=n_pairs),
        out_shape=jax.ShapeDtypeStruct((B_pad, P_pad), jnp.float32),
        in_specs=[pl.BlockSpec(memory_space=pltpu.MemorySpace.VMEM)] * 8,
        out_specs=pl.BlockSpec(memory_space=pltpu.MemorySpace.VMEM),
        compiler_params=pltpu.CompilerParams(vmem_limit_bytes=vmem_limit),
        cost_estimate=cost,
    )(idx, img_p, tbl, wh, ww, we, vimg, vpair)
    return score_pad[:B, :n_pairs]


# ----------------------------------------------------------------------------
# Deterministic parameter init (synthetic; no checkpoint loading)
# ----------------------------------------------------------------------------
def _init_linear(key, fan_in, fan_out):
    kw, kb = jax.random.split(key)
    bound = 1.0 / jnp.sqrt(jnp.float32(fan_in))
    w = jax.random.uniform(kw, (fan_in, fan_out), jnp.float32, -bound, bound)
    b = jax.random.uniform(kb, (1, fan_out), jnp.float32, -bound, bound)
    return w, b


def _init_conditional(key, inp_dim, out_dim, hid_dim):
    k1, k2 = jax.random.split(key)
    w1, b1 = _init_linear(k1, 2 * inp_dim, hid_dim)
    w2, b2 = _init_linear(k2, hid_dim, out_dim)
    return {"w1": w1, "b1": b1,
            "gamma": jnp.ones((1, hid_dim), jnp.float32),
            "beta": jnp.zeros((1, hid_dim), jnp.float32),
            "w2": w2, "b2": b2}


def _init_comp(key, wemb_dim, emb_dim, hid_dim):
    k1, k2 = jax.random.split(key)
    w1, b1 = _init_linear(k1, 2 * wemb_dim, hid_dim)
    w2, b2 = _init_linear(k2, hid_dim, emb_dim)
    return {"w1": w1, "b1": b1, "w2": w2, "b2": b2}


def _init_image_embedder(key, vemb_dim, hid_dim, emb_dim):
    k1, k2, k3 = jax.random.split(key, 3)
    w1, b1 = _init_linear(k1, vemb_dim, hid_dim)
    w2, b2 = _init_linear(k2, hid_dim, hid_dim)
    w3, b3 = _init_linear(k3, hid_dim, emb_dim)
    return {"w1": w1, "b1": b1,
            "g1": jnp.ones((1, hid_dim), jnp.float32),
            "be1": jnp.zeros((1, hid_dim), jnp.float32),
            "w2": w2, "b2": b2,
            "g2": jnp.ones((1, hid_dim), jnp.float32),
            "be2": jnp.zeros((1, hid_dim), jnp.float32),
            "w3": w3, "b3": b3}


# ----------------------------------------------------------------------------
# Pure-JAX reference (mirrors the PyTorch math) for a correctness check
# ----------------------------------------------------------------------------
def _ref_conditional(a, o, p):
    h = jnp.concatenate([a, o], 1) @ p["w1"] + p["b1"]
    mu = jnp.mean(h, -1, keepdims=True)
    var = jnp.mean((h - mu) ** 2, -1, keepdims=True)
    h = (h - mu) / jnp.sqrt(var + LN_EPS) * p["gamma"] + p["beta"]
    h = jnp.maximum(h, 0.0)
    return jax.nn.sigmoid(h @ p["w2"] + p["b2"]) * a


def _ref_forward(params, img, vai, voi):
    a = params["attr_embds"][vai]
    o = params["obj_embds"][voi]
    p = params["image_embedder"]
    h = img @ p["w1"] + p["b1"]
    mu = jnp.mean(h, -1, keepdims=True); var = jnp.mean((h - mu) ** 2, -1, keepdims=True)
    h = jnp.maximum((h - mu) / jnp.sqrt(var + LN_EPS) * p["g1"] + p["be1"], 0.0)
    h = h @ p["w2"] + p["b2"]
    mu = jnp.mean(h, -1, keepdims=True); var = jnp.mean((h - mu) ** 2, -1, keepdims=True)
    h = jnp.maximum((h - mu) / jnp.sqrt(var + LN_EPS) * p["g2"] + p["be2"], 0.0)
    img_feats = jnp.maximum(h @ p["w3"] + p["b3"], 0.0)

    xa = _ref_conditional(a, o, params["attr_embdr"])
    xo = _ref_conditional(o, a, params["obj_embdr"])
    pc = params["comp"]
    hh = jnp.maximum(jnp.concatenate([xa, xo], 1) @ pc["w1"] + pc["b1"], 0.0)
    pe = hh @ pc["w2"] + pc["b2"]

    pe_t = pe.T                                                   # (E, P)
    nrm = jnp.maximum(jnp.sqrt(jnp.sum(pe_t * pe_t, 1, keepdims=True)), NORM_EPS)
    return img_feats @ (pe_t / nrm)


# ----------------------------------------------------------------------------
if __name__ == "__main__":
    key = jax.random.PRNGKey(0)
    WEMB, VEMB, HID, EMB = 32, 64, 32, 32
    N_ATTRS, N_OBJS, N_PAIRS, BATCH = 6, 5, 16, 4

    ks = jax.random.split(key, 8)
    params = {
        # TODO(synk): original model loads graph embeddings via torch.load;
        # replaced with deterministic random init of the same shapes.
        "attr_embds": jax.random.normal(ks[0], (N_ATTRS, WEMB), jnp.float32),
        "obj_embds": jax.random.normal(ks[1], (N_OBJS, WEMB), jnp.float32),
        "attr_embdr": _init_conditional(ks[2], WEMB, WEMB, HID),
        "obj_embdr": _init_conditional(ks[3], WEMB, WEMB, HID),
        "comp": _init_comp(ks[4], WEMB, EMB, HID),
        "image_embedder": _init_image_embedder(ks[5], VEMB, HID, EMB),
    }

    # synthetic dset.pairs (val pairs) and a batch of image features
    val_attr_idx = jax.random.randint(ks[6], (N_PAIRS,), 0, N_ATTRS, jnp.int32)
    val_obj_idx = jax.random.randint(ks[7], (N_PAIRS,), 0, N_OBJS, jnp.int32)
    img = jax.random.normal(jax.random.PRNGKey(42), (BATCH, VEMB), jnp.float32)

    packed = pack_params(params, val_attr_idx, val_obj_idx)
    score = conditional_val_forward(packed, img, n_pairs=N_PAIRS)
    score = jax.block_until_ready(score)

    # build the per-pair scores dict exactly like val_forward_dotpr (host glue)
    pairs = [(f"attr{int(a)}", f"obj{int(o)}")
             for a, o in zip(val_attr_idx.tolist(), val_obj_idx.tolist())]
    scores = {pair: score[:, i] for i, pair in enumerate(pairs)}

    # correctness check against a pure-JAX reference of the PyTorch math
    score_ref = _ref_forward(params, img, val_attr_idx, val_obj_idx)
    assert jnp.allclose(score, score_ref, atol=1e-4, rtol=1e-4), (
        float(jnp.max(jnp.abs(score - score_ref))))

    print("KERNEL_OK")
</pallas_src>

<mosaic_0001>
module attributes {stable_mosaic.version = 11 : i64} {
  func.func @_fused_kernel(%arg0: memref<2x128xi32, #tpu.memory_space<vmem>>, %arg1: memref<8x64xf32, #tpu.memory_space<vmem>>, %arg2: memref<32x11xf32, #tpu.memory_space<vmem>>, %arg3: memref<192x32xf32, #tpu.memory_space<vmem>>, %arg4: memref<192x32xf32, #tpu.memory_space<vmem>>, %arg5: memref<32x32xf32, #tpu.memory_space<vmem>>, %arg6: memref<7x32xf32, #tpu.memory_space<vmem>>, %arg7: memref<32x10xf32, #tpu.memory_space<vmem>>, %arg8: memref<8x128xf32, #tpu.memory_space<vmem>>) attributes {dimension_semantics = [], scalar_prefetch = 0 : i64, scratch_operands = 0 : i64, tpu.core_type = #tpu.core_type<tc>} {
    %0 = tpu.iota {dimensions = array<i32: 0>} : vector<11x128xi32>
    %c0 = arith.constant 0 : index
    %c0_0 = arith.constant 0 : index
    %1 = vector.load %arg0[%c0, %c0_0] : memref<2x128xi32, #tpu.memory_space<vmem>>, vector<1x128xi32>
    %2 = vector.broadcast %1 : vector<1x128xi32> to vector<11x128xi32>
    %3 = arith.cmpi eq, %0, %2 : vector<11x128xi32>
    %4 = arith.extui %3 : vector<11x128xi1> to vector<11x128xi32>
    %5 = arith.sitofp %4 : vector<11x128xi32> to vector<11x128xf32>
    %c1 = arith.constant 1 : index
    %c0_1 = arith.constant 0 : index
    %6 = vector.load %arg0[%c1, %c0_1] : memref<2x128xi32, #tpu.memory_space<vmem>>, vector<1x128xi32>
    %7 = vector.broadcast %6 : vector<1x128xi32> to vector<11x128xi32>
    %8 = arith.cmpi eq, %0, %7 : vector<11x128xi32>
    %9 = arith.extui %8 : vector<11x128xi1> to vector<11x128xi32>
    %10 = arith.sitofp %9 : vector<11x128xi32> to vector<11x128xf32>
    %c0_2 = arith.constant 0 : index
    %c0_3 = arith.constant 0 : index
    %11 = vector.load %arg2[%c0_2, %c0_3] : memref<32x11xf32, #tpu.memory_space<vmem>>, vector<32x11xf32>
    %cst = arith.constant dense<0.000000e+00> : vector<32x128xf32>
    %12 = tpu.matmul %11, %5, %cst {dimension_numbers = #tpu.dot_dimension_numbers<[1], [0], [0], [1], [0, 0, 1, 1], [], []>} : vector<32x11xf32>, vector<11x128xf32>, vector<32x128xf32> -> vector<32x128xf32>
    %cst_4 = arith.constant dense<0.000000e+00> : vector<32x128xf32>
    %13 = tpu.matmul %11, %10, %cst_4 {dimension_numbers = #tpu.dot_dimension_numbers<[1], [0], [0], [1], [0, 0, 1, 1], [], []>} : vector<32x11xf32>, vector<11x128xf32>, vector<32x128xf32> -> vector<32x128xf32>
    %c0_5 = arith.constant 0 : index
    %c0_6 = arith.constant 0 : index
    %14 = vector.load %arg3[%c0_5, %c0_6] : memref<192x32xf32, #tpu.memory_space<vmem>>, vector<64x32xf32>
    %c64 = arith.constant 64 : index
    %c0_7 = arith.constant 0 : index
    %15 = vector.load %arg3[%c64, %c0_7] : memref<192x32xf32, #tpu.memory_space<vmem>>, vector<32x32xf32>
    %c0_8 = arith.constant 0 : index
    %c0_9 = arith.constant 0 : index
    %16 = vector.load %arg1[%c0_8, %c0_9] : memref<8x64xf32, #tpu.memory_space<vmem>>, vector<8x64xf32>
    %cst_10 = arith.constant dense<0.000000e+00> : vector<8x32xf32>
    %17 = tpu.matmul %16, %14, %cst_10 {dimension_numbers = #tpu.dot_dimension_numbers<[1], [0], [0], [1], [0, 0, 1, 1], [], []>} : vector<8x64xf32>, vector<64x32xf32>, vector<8x32xf32> -> vector<8x32xf32>
    %c0_11 = arith.constant 0 : index
    %c0_12 = arith.constant 0 : index
    %18 = vector.load %arg6[%c0_11, %c0_12] : memref<7x32xf32, #tpu.memory_space<vmem>>, vector<1x32xf32>
    %19 = vector.broadcast %18 : vector<1x32xf32> to vector<8x32xf32>
    %20 = arith.addf %17, %19 : vector<8x32xf32>
    %c1_13 = arith.constant 1 : index
    %c0_14 = arith.constant 0 : index
    %21 = vector.load %arg6[%c1_13, %c0_14] : memref<7x32xf32, #tpu.memory_space<vmem>>, vector<1x32xf32>
    %c2 = arith.constant 2 : index
    %c0_15 = arith.constant 0 : index
    %22 = vector.load %arg6[%c2, %c0_15] : memref<7x32xf32, #tpu.memory_space<vmem>>, vector<1x32xf32>
    %cst_16 = arith.constant dense<0.000000e+00> : vector<8xf32>
    %23 = vector.multi_reduction <add>, %20, %cst_16 [1] : vector<8x32xf32> to vector<8xf32>
    %24 = vector.shape_cast %23 : vector<8xf32> to vector<8x1xf32>
    %25 = arith.mulf %20, %20 : vector<8x32xf32>
    %cst_17 = arith.constant dense<0.000000e+00> : vector<8xf32>
    %26 = vector.multi_reduction <add>, %25, %cst_17 [1] : vector<8x32xf32> to vector<8xf32>
    %27 = vector.shape_cast %26 : vector<8xf32> to vector<8x1xf32>
    %cst_18 = arith.constant 3.125000e-02 : f32
    %28 = vector.broadcast %cst_18 : f32 to vector<8x1xf32>
    %29 = arith.mulf %24, %28 : vector<8x1xf32>
    %cst_19 = arith.constant 3.125000e-02 : f32
    %30 = vector.broadcast %cst_19 : f32 to vector<8x1xf32>
    %31 = arith.mulf %27, %30 : vector<8x1xf32>
    %32 = arith.mulf %29, %29 : vector<8x1xf32>
    %33 = arith.subf %31, %32 : vector<8x1xf32>
    %34 = vector.broadcast %29 : vector<8x1xf32> to vector<8x32xf32>
    %35 = arith.subf %20, %34 : vector<8x32xf32>
    %cst_20 = arith.constant 9.99999974E-6 : f32
    %36 = vector.broadcast %cst_20 : f32 to vector<8x1xf32>
    %37 = arith.addf %33, %36 : vector<8x1xf32>
    %38 = math.rsqrt %37 : vector<8x1xf32>
    %39 = vector.broadcast %38 : vector<8x1xf32> to vector<8x32xf32>
    %40 = arith.mulf %35, %39 : vector<8x32xf32>
    %41 = vector.broadcast %21 : vector<1x32xf32> to vector<8x32xf32>
    %42 = arith.mulf %40, %41 : vector<8x32xf32>
    %43 = vector.broadcast %22 : vector<1x32xf32> to vector<8x32xf32>
    %44 = arith.addf %42, %43 : vector<8x32xf32>
    %cst_21 = arith.constant 0.000000e+00 : f32
    %45 = vector.broadcast %cst_21 : f32 to vector<8x32xf32>
    %46 = arith.maximumf %44, %45 : vector<8x32xf32>
    %cst_22 = arith.constant dense<0.000000e+00> : vector<8x32xf32>
    %47 = tpu.matmul %46, %15, %cst_22 {dimension_numbers = #tpu.dot_dimension_numbers<[1], [0], [0], [1], [0, 0, 1, 1], [], []>} : vector<8x32xf32>, vector<32x32xf32>, vector<8x32xf32> -> vector<8x32xf32>
    %c3 = arith.constant 3 : index
    %c0_23 = arith.constant 0 : index
    %48 = vector.load %arg6[%c3, %c0_23] : memref<7x32xf32, #tpu.memory_space<vmem>>, vector<1x32xf32>
    %49 = vector.broadcast %48 : vector<1x32xf32> to vector<8x32xf32>
    %50 = arith.addf %47, %49 : vector<8x32xf32>
    %c4 = arith.constant 4 : index
    %c0_24 = arith.constant 0 : index
    %51 = vector.load %arg6[%c4, %c0_24] : memref<7x32xf32, #tpu.memory_space<vmem>>, vector<1x32xf32>
    %c5 = arith.constant 5 : index
    %c0_25 = arith.constant 0 : index
    %52 = vector.load %arg6[%c5, %c0_25] : memref<7x32xf32, #tpu.memory_space<vmem>>, vector<1x32xf32>
    %cst_26 = arith.constant dense<0.000000e+00> : vector<8xf32>
    %53 = vector.multi_reduction <add>, %50, %cst_26 [1] : vector<8x32xf32> to vector<8xf32>
    %54 = vector.shape_cast %53 : vector<8xf32> to vector<8x1xf32>
    %55 = arith.mulf %50, %50 : vector<8x32xf32>
    %cst_27 = arith.constant dense<0.000000e+00> : vector<8xf32>
    %56 = vector.multi_reduction <add>, %55, %cst_27 [1] : vector<8x32xf32> to vector<8xf32>
    %57 = vector.shape_cast %56 : vector<8xf32> to vector<8x1xf32>
    %cst_28 = arith.constant 3.125000e-02 : f32
    %58 = vector.broadcast %cst_28 : f32 to vector<8x1xf32>
    %59 = arith.mulf %54, %58 : vector<8x1xf32>
    %cst_29 = arith.constant 3.125000e-02 : f32
    %60 = vector.broadcast %cst_29 : f32 to vector<8x1xf32>
    %61 = arith.mulf %57, %60 : vector<8x1xf32>
    %62 = arith.mulf %59, %59 : vector<8x1xf32>
    %63 = arith.subf %61, %62 : vector<8x1xf32>
    %64 = vector.broadcast %59 : vector<8x1xf32> to vector<8x32xf32>
    %65 = arith.subf %50, %64 : vector<8x32xf32>
    %cst_30 = arith.constant 9.99999974E-6 : f32
    %66 = vector.broadcast %cst_30 : f32 to vector<8x1xf32>
    %67 = arith.addf %63, %66 : vector<8x1xf32>
    %68 = math.rsqrt %67 : vector<8x1xf32>
    %69 = vector.broadcast %68 : vector<8x1xf32> to vector<8x32xf32>
    %70 = arith.mulf %65, %69 : vector<8x32xf32>
    %71 = vector.broadcast %51 : vector<1x32xf32> to vector<8x32xf32>
    %72 = arith.mulf %70, %71 : vector<8x32xf32>
    %73 = vector.broadcast %52 : vector<1x32xf32> to vector<8x32xf32>
    %74 = arith.addf %72, %73 : vector<8x32xf32>
    %cst_31 = arith.constant 0.000000e+00 : f32
    %75 = vector.broadcast %cst_31 : f32 to vector<8x32xf32>
    %76 = arith.maximumf %74, %75 : vector<8x32xf32>
    %c0_32 = arith.constant 0 : index
    %c0_33 = arith.constant 0 : index
    %77 = vector.load %arg5[%c0_32, %c0_33] : memref<32x32xf32, #tpu.memory_space<vmem>>, vector<32x32xf32>
    %cst_34 = arith.constant dense<0.000000e+00> : vector<8x32xf32>
    %78 = tpu.matmul %76, %77, %cst_34 {dimension_numbers = #tpu.dot_dimension_numbers<[1], [0], [0], [1], [0, 0, 1, 1], [], []>} : vector<8x32xf32>, vector<32x32xf32>, vector<8x32xf32> -> vector<8x32xf32>
    %c6 = arith.constant 6 : index
    %c0_35 = arith.constant 0 : index
    %79 = vector.load %arg6[%c6, %c0_35] : memref<7x32xf32, #tpu.memory_space<vmem>>, vector<1x32xf32>
    %80 = vector.broadcast %79 : vector<1x32xf32> to vector<8x32xf32>
    %81 = arith.addf %78, %80 : vector<8x32xf32>
    %cst_36 = arith.constant 0.000000e+00 : f32
    %82 = vector.broadcast %cst_36 : f32 to vector<8x32xf32>
    %83 = arith.maximumf %81, %82 : vector<8x32xf32>
    %c0_37 = arith.constant 0 : index
    %c0_38 = arith.constant 0 : index
    %84 = vector.load %arg4[%c0_37, %c0_38] : memref<192x32xf32, #tpu.memory_space<vmem>>, vector<32x32xf32>
    %c32 = arith.constant 32 : index
    %c0_39 = arith.constant 0 : index
    %85 = vector.load %arg4[%c32, %c0_39] : memref<192x32xf32, #tpu.memory_space<vmem>>, vector<32x32xf32>
    %c64_40 = arith.constant 64 : index
    %c0_41 = arith.constant 0 : index
    %86 = vector.load %arg4[%c64_40, %c0_41] : memref<192x32xf32, #tpu.memory_space<vmem>>, vector<32x32xf32>
    %c96 = arith.constant 96 : index
    %c0_42 = arith.constant 0 : index
    %87 = vector.load %arg4[%c96, %c0_42] : memref<192x32xf32, #tpu.memory_space<vmem>>, vector<32x32xf32>
    %c128 = arith.constant 128 : index
    %c0_43 = arith.constant 0 : index
    %88 = vector.load %arg4[%c128, %c0_43] : memref<192x32xf32, #tpu.memory_space<vmem>>, vector<32x32xf32>
    %c160 = arith.constant 160 : index
    %c0_44 = arith.constant 0 : index
    %89 = vector.load %arg4[%c160, %c0_44] : memref<192x32xf32, #tpu.memory_space<vmem>>, vector<32x32xf32>
    %c96_45 = arith.constant 96 : index
    %c0_46 = arith.constant 0 : index
    %90 = vector.load %arg3[%c96_45, %c0_46] : memref<192x32xf32, #tpu.memory_space<vmem>>, vector<32x32xf32>
    %c128_47 = arith.constant 128 : index
    %c0_48 = arith.constant 0 : index
    %91 = vector.load %arg3[%c128_47, %c0_48] : memref<192x32xf32, #tpu.memory_space<vmem>>, vector<32x32xf32>
    %c160_49 = arith.constant 160 : index
    %c0_50 = arith.constant 0 : index
    %92 = vector.load %arg3[%c160_49, %c0_50] : memref<192x32xf32, #tpu.memory_space<vmem>>, vector<32x32xf32>
    %c0_51 = arith.constant 0 : index
    %c0_52 = arith.constant 0 : index
    %93 = vector.load %arg7[%c0_51, %c0_52] : memref<32x10xf32, #tpu.memory_space<vmem>>, vector<32x1xf32>
    %c0_53 = arith.constant 0 : index
    %c1_54 = arith.constant 1 : index
    %94 = vector.load %arg7[%c0_53, %c1_54] : memref<32x10xf32, #tpu.memory_space<vmem>>, vector<32x1xf32>
    %c0_55 = arith.constant 0 : index
    %c2_56 = arith.constant 2 : index
    %95 = vector.load %arg7[%c0_55, %c2_56] : memref<32x10xf32, #tpu.memory_space<vmem>>, vector<32x1xf32>
    %c0_57 = arith.constant 0 : index
    %c7 = arith.constant 7 : index
    %96 = vector.load %arg7[%c0_57, %c7] : memref<32x10xf32, #tpu.memory_space<vmem>>, vector<32x1xf32>
    %cst_58 = arith.constant dense<0.000000e+00> : vector<32x128xf32>
    %97 = tpu.matmul %84, %12, %cst_58 {dimension_numbers = #tpu.dot_dimension_numbers<[1], [0], [0], [1], [0, 0, 1, 1], [], []>} : vector<32x32xf32>, vector<32x128xf32>, vector<32x128xf32> -> vector<32x128xf32>
    %cst_59 = arith.constant dense<0.000000e+00> : vector<32x128xf32>
    %98 = tpu.matmul %85, %13, %cst_59 {dimension_numbers = #tpu.dot_dimension_numbers<[1], [0], [0], [1], [0, 0, 1, 1], [], []>} : vector<32x32xf32>, vector<32x128xf32>, vector<32x128xf32> -> vector<32x128xf32>
    %99 = arith.addf %97, %98 : vector<32x128xf32>
    %100 = vector.broadcast %93 : vector<32x1xf32> to vector<32x128xf32>
    %101 = arith.addf %99, %100 : vector<32x128xf32>
    %cst_60 = arith.constant dense<0.000000e+00> : vector<128xf32>
    %102 = vector.multi_reduction <add>, %101, %cst_60 [0] : vector<32x128xf32> to vector<128xf32>
    %103 = vector.shape_cast %102 : vector<128xf32> to vector<1x128xf32>
    %104 = arith.mulf %101, %101 : vector<32x128xf32>
    %cst_61 = arith.constant dense<0.000000e+00> : vector<128xf32>
    %105 = vector.multi_reduction <add>, %104, %cst_61 [0] : vector<32x128xf32> to vector<128xf32>
    %106 = vector.shape_cast %105 : vector<128xf32> to vector<1x128xf32>
    %cst_62 = arith.constant 3.125000e-02 : f32
    %107 = vector.broadcast %cst_62 : f32 to vector<1x128xf32>
    %108 = arith.mulf %103, %107 : vector<1x128xf32>
    %cst_63 = arith.constant 3.125000e-02 : f32
    %109 = vector.broadcast %cst_63 : f32 to vector<1x128xf32>
    %110 = arith.mulf %106, %109 : vector<1x128xf32>
    %111 = arith.mulf %108, %108 : vector<1x128xf32>
    %112 = arith.subf %110, %111 : vector<1x128xf32>
    %113 = vector.broadcast %108 : vector<1x128xf32> to vector<32x128xf32>
    %114 = arith.subf %101, %113 : vector<32x128xf32>
    %cst_64 = arith.constant 9.99999974E-6 : f32
    %115 = vector.broadcast %cst_64 : f32 to vector<1x128xf32>
    %116 = arith.addf %112, %115 : vector<1x128xf32>
    %117 = math.rsqrt %116 : vector<1x128xf32>
    %118 = vector.broadcast %117 : vector<1x128xf32> to vector<32x128xf32>
    %119 = arith.mulf %114, %118 : vector<32x128xf32>
    %120 = vector.broadcast %94 : vector<32x1xf32> to vector<32x128xf32>
    %121 = arith.mulf %119, %120 : vector<32x128xf32>
    %122 = vector.broadcast %95 : vector<32x1xf32> to vector<32x128xf32>
    %123 = arith.addf %121, %122 : vector<32x128xf32>
    %cst_65 = arith.constant 0.000000e+00 : f32
    %124 = vector.broadcast %cst_65 : f32 to vector<32x128xf32>
    %125 = arith.maximumf %123, %124 : vector<32x128xf32>
    %cst_66 = arith.constant dense<0.000000e+00> : vector<32x128xf32>
    %126 = tpu.matmul %90, %125, %cst_66 {dimension_numbers = #tpu.dot_dimension_numbers<[1], [0], [0], [1], [0, 0, 1, 1], [], []>} : vector<32x32xf32>, vector<32x128xf32>, vector<32x128xf32> -> vector<32x128xf32>
    %127 = vector.broadcast %96 : vector<32x1xf32> to vector<32x128xf32>
    %128 = arith.addf %126, %127 : vector<32x128xf32>
    %129 = arith.negf %128 : vector<32x128xf32>
    %130 = math.exp %129 : vector<32x128xf32>
    %cst_67 = arith.constant 1.000000e+00 : f32
    %131 = vector.broadcast %cst_67 : f32 to vector<32x128xf32>
    %132 = arith.addf %131, %130 : vector<32x128xf32>
    %133 = arith.divf %131, %132 : vector<32x128xf32>
    %134 = arith.mulf %133, %12 : vector<32x128xf32>
    %c0_68 = arith.constant 0 : index
    %c3_69 = arith.constant 3 : index
    %135 = vector.load %arg7[%c0_68, %c3_69] : memref<32x10xf32, #tpu.memory_space<vmem>>, vector<32x1xf32>
    %c0_70 = arith.constant 0 : index
    %c4_71 = arith.constant 4 : index
    %136 = vector.load %arg7[%c0_70, %c4_71] : memref<32x10xf32, #tpu.memory_space<vmem>>, vector<32x1xf32>
    %c0_72 = arith.constant 0 : index
    %c5_73 = arith.constant 5 : index
    %137 = vector.load %arg7[%c0_72, %c5_73] : memref<32x10xf32, #tpu.memory_space<vmem>>, vector<32x1xf32>
    %c0_74 = arith.constant 0 : index
    %c8 = arith.constant 8 : index
    %138 = vector.load %arg7[%c0_74, %c8] : memref<32x10xf32, #tpu.memory_space<vmem>>, vector<32x1xf32>
    %cst_75 = arith.constant dense<0.000000e+00> : vector<32x128xf32>
    %139 = tpu.matmul %86, %13, %cst_75 {dimension_numbers = #tpu.dot_dimension_numbers<[1], [0], [0], [1], [0, 0, 1, 1], [], []>} : vector<32x32xf32>, vector<32x128xf32>, vector<32x128xf32> -> vector<32x128xf32>
    %cst_76 = arith.constant dense<0.000000e+00> : vector<32x128xf32>
    %140 = tpu.matmul %87, %12, %cst_76 {dimension_numbers = #tpu.dot_dimension_numbers<[1], [0], [0], [1], [0, 0, 1, 1], [], []>} : vector<32x32xf32>, vector<32x128xf32>, vector<32x128xf32> -> vector<32x128xf32>
    %141 = arith.addf %139, %140 : vector<32x128xf32>
    %142 = vector.broadcast %135 : vector<32x1xf32> to vector<32x128xf32>
    %143 = arith.addf %141, %142 : vector<32x128xf32>
    %cst_77 = arith.constant dense<0.000000e+00> : vector<128xf32>
    %144 = vector.multi_reduction <add>, %143, %cst_77 [0] : vector<32x128xf32> to vector<128xf32>
    %145 = vector.shape_cast %144 : vector<128xf32> to vector<1x128xf32>
    %146 = arith.mulf %143, %143 : vector<32x128xf32>
    %cst_78 = arith.constant dense<0.000000e+00> : vector<128xf32>
    %147 = vector.multi_reduction <add>, %146, %cst_78 [0] : vector<32x128xf32> to vector<128xf32>
    %148 = vector.shape_cast %147 : vector<128xf32> to vector<1x128xf32>
    %cst_79 = arith.constant 3.125000e-02 : f32
    %149 = vector.broadcast %cst_79 : f32 to vector<1x128xf32>
    %150 = arith.mulf %145, %149 : vector<1x128xf32>
    %cst_80 = arith.constant 3.125000e-02 : f32
    %151 = vector.broadcast %cst_80 : f32 to vector<1x128xf32>
    %152 = arith.mulf %148, %151 : vector<1x128xf32>
    %153 = arith.mulf %150, %150 : vector<1x128xf32>
    %154 = arith.subf %152, %153 : vector<1x128xf32>
    %155 = vector.broadcast %150 : vector<1x128xf32> to vector<32x128xf32>
    %156 = arith.subf %143, %155 : vector<32x128xf32>
    %cst_81 = arith.constant 9.99999974E-6 : f32
    %157 = vector.broadcast %cst_81 : f32 to vector<1x128xf32>
    %158 = arith.addf %154, %157 : vector<1x128xf32>
    %159 = math.rsqrt %158 : vector<1x128xf32>
    %160 = vector.broadcast %159 : vector<1x128xf32> to vector<32x128xf32>
    %161 = arith.mulf %156, %160 : vector<32x128xf32>
    %162 = vector.broadcast %136 : vector<32x1xf32> to vector<32x128xf32>
    %163 = arith.mulf %161, %162 : vector<32x128xf32>
    %164 = vector.broadcast %137 : vector<32x1xf32> to vector<32x128xf32>
    %165 = arith.addf %163, %164 : vector<32x128xf32>
    %cst_82 = arith.constant 0.000000e+00 : f32
    %166 = vector.broadcast %cst_82 : f32 to vector<32x128xf32>
    %167 = arith.maximumf %165, %166 : vector<32x128xf32>
    %cst_83 = arith.constant dense<0.000000e+00> : vector<32x128xf32>
    %168 = tpu.matmul %91, %167, %cst_83 {dimension_numbers = #tpu.dot_dimension_numbers<[1], [0], [0], [1], [0, 0, 1, 1], [], []>} : vector<32x32xf32>, vector<32x128xf32>, vector<32x128xf32> -> vector<32x128xf32>
    %169 = vector.broadcast %138 : vector<32x1xf32> to vector<32x128xf32>
    %170 = arith.addf %168, %169 : vector<32x128xf32>
    %171 = arith.negf %170 : vector<32x128xf32>
    %172 = math.exp %171 : vector<32x128xf32>
    %cst_84 = arith.constant 1.000000e+00 : f32
    %173 = vector.broadcast %cst_84 : f32 to vector<32x128xf32>
    %174 = arith.addf %173, %172 : vector<32x128xf32>
    %175 = arith.divf %173, %174 : vector<32x128xf32>
    %176 = arith.mulf %175, %13 : vector<32x128xf32>
    %cst_85 = arith.constant dense<0.000000e+00> : vector<32x128xf32>
    %177 = tpu.matmul %88, %134, %cst_85 {dimension_numbers = #tpu.dot_dimension_numbers<[1], [0], [0], [1], [0, 0, 1, 1], [], []>} : vector<32x32xf32>, vector<32x128xf32>, vector<32x128xf32> -> vector<32x128xf32>
    %cst_86 = arith.constant dense<0.000000e+00> : vector<32x128xf32>
    %178 = tpu.matmul %89, %176, %cst_86 {dimension_numbers = #tpu.dot_dimension_numbers<[1], [0], [0], [1], [0, 0, 1, 1], [], []>} : vector<32x32xf32>, vector<32x128xf32>, vector<32x128xf32> -> vector<32x128xf32>
    %179 = arith.addf %177, %178 : vector<32x128xf32>
    %c0_87 = arith.constant 0 : index
    %c6_88 = arith.constant 6 : index
    %180 = vector.load %arg7[%c0_87, %c6_88] : memref<32x10xf32, #tpu.memory_space<vmem>>, vector<32x1xf32>
    %181 = vector.broadcast %180 : vector<32x1xf32> to vector<32x128xf32>
    %182 = arith.addf %179, %181 : vector<32x128xf32>
    %cst_89 = arith.constant 0.000000e+00 : f32
    %183 = vector.broadcast %cst_89 : f32 to vector<32x128xf32>
    %184 = arith.maximumf %182, %183 : vector<32x128xf32>
    %cst_90 = arith.constant dense<0.000000e+00> : vector<32x128xf32>
    %185 = tpu.matmul %92, %184, %cst_90 {dimension_numbers = #tpu.dot_dimension_numbers<[1], [0], [0], [1], [0, 0, 1, 1], [], []>} : vector<32x32xf32>, vector<32x128xf32>, vector<32x128xf32> -> vector<32x128xf32>
    %c0_91 = arith.constant 0 : index
    %c9 = arith.constant 9 : index
    %186 = vector.load %arg7[%c0_91, %c9] : memref<32x10xf32, #tpu.memory_space<vmem>>, vector<32x1xf32>
    %187 = vector.broadcast %186 : vector<32x1xf32> to vector<32x128xf32>
    %188 = arith.addf %185, %187 : vector<32x128xf32>
    %189 = tpu.iota {dimensions = array<i32: 1>} : vector<1x128xi32>
    %c16_i32 = arith.constant 16 : i32
    %190 = vector.broadcast %c16_i32 : i32 to vector<1x128xi32>
    %191 = arith.cmpi slt, %189, %190 : vector<1x128xi32>
    %cst_92 = arith.constant 0.000000e+00 : f32
    %192 = vector.shape_cast %191 : vector<1x128xi1> to vector<1x128xi1>
    %193 = vector.broadcast %192 : vector<1x128xi1> to vector<32x128xi1>
    %194 = vector.broadcast %cst_92 : f32 to vector<32x128xf32>
    %195 = arith.select %193, %188, %194 : vector<32x128xi1>, vector<32x128xf32>
    %196 = arith.mulf %195, %195 : vector<32x128xf32>
    %cst_93 = arith.constant dense<0.000000e+00> : vector<32xf32>
    %197 = vector.multi_reduction <add>, %196, %cst_93 [1] : vector<32x128xf32> to vector<32xf32>
    %198 = vector.shape_cast %197 : vector<32xf32> to vector<32x1xf32>
    %cst_94 = arith.constant 1.000000e-24 : f32
    %199 = vector.broadcast %cst_94 : f32 to vector<32x1xf32>
    %200 = arith.maximumf %198, %199 : vector<32x1xf32>
    %201 = math.rsqrt %200 : vector<32x1xf32>
    %202 = vector.broadcast %201 : vector<32x1xf32> to vector<32x128xf32>
    %203 = arith.mulf %195, %202 : vector<32x128xf32>
    %cst_95 = arith.constant dense<0.000000e+00> : vector<8x128xf32>
    %204 = tpu.matmul %83, %203, %cst_95 {dimension_numbers = #tpu.dot_dimension_numbers<[1], [0], [0], [1], [0, 0, 1, 1], [], []>} : vector<8x32xf32>, vector<32x128xf32>, vector<8x128xf32> -> vector<8x128xf32>
    %c0_96 = arith.constant 0 : index
    %c0_97 = arith.constant 0 : index
    %205 = vector.load %arg8[%c0_96, %c0_97] : memref<8x128xf32, #tpu.memory_space<vmem>>, vector<8x128xf32>
    tpu.vector_store %arg8[%c0_96, %c0_97], %204 {strides = array<i32>} : memref<8x128xf32, #tpu.memory_space<vmem>>, vector<8x128xf32>,
    return
  }
}

</mosaic_0001>

<bundles_post_ra>
// kernel: conditional_val_forward.1
= control target key start
LH: loop header
LB: loop body
LE: loop exit
PB: predicated region body
PF: predicated region fallthrough
CT: control target
= control target key end

     0   :  { %v29_v0 = vlaneseq  ;;  %vm58_vm0 = vcmask 89088   ;;  %vm71_vm1 = vcmask 1042432   ;;  %v2503_v6 = vmov 0.0   ;;  %s3022_s0 = inlined_call_operand.vmem [shape: s32[2,128], index: 0, kind: input, shape index: {}]   ;;  %s3023_s2 = inlined_call_operand.vmem [shape: f32[32,11], index: 2, kind: input, shape index: {}]   ;;  %s3024_s3 = inlined_call_operand.vmem [shape: f32[192,32], index: 3, kind: input, shape index: {}]   ;;  %s3025_s1 = inlined_call_operand.vmem [shape: f32[8,64], index: 1, kind: input, shape index: {}]   ;;  %s3026_s4 = inlined_call_operand.vmem [shape: f32[192,32], index: 4, kind: input, shape index: {}]   ;;  %s3027_s6 = inlined_call_operand.vmem [shape: f32[7,32], index: 6, kind: input, shape index: {}]   ;;  %s3028_s7 = inlined_call_operand.vmem [shape: f32[32,10], index: 7, kind: input, shape index: {}]   ;;  %s3029_s5 = inlined_call_operand.vmem [shape: f32[32,32], index: 5, kind: input, shape index: {}]   ;;  %s3030_s8 = inlined_call_operand.vmem [shape: f32[8,128], index: 8, kind: output, shape index: {}]  }
   0x1   :  { %v54_v1 = vld [vmem:[%s3023_s2] sm:$0xff]  ;;  %v2504_v9 = vmov 1.0   ;;  %v249_v13 = vld [vmem:[%s3024_s3 + $0x8] sm:$0xff]  ;;  %v2505_v16 = vmov 0.0|0.0   ;;  %v56_v17 = vld [vmem:[%s3023_s2 + $0x10] sm:$0xff]  ;;  %vm2506_vm8 = vmmov 0  }
   0x2   :  { %v30_v2 = vshrl.u32 %v29_v0, 7  ;;  %2099 = vmatprep.mubr.msk.f32.mxu0 %vm58_vm0, %v54_v1  ;;  %2109 = vmatprep.mubr.msk.f32.mxu1 %vm58_vm0, %v54_v1  ;;  %v1914_v3 = vld [vmem:[%s3022_s0] ss:$0 sm:$0xff]  ;;  %v1917_v4 = vld [vmem:[%s3022_s0 + $0x1] ss:$0 sm:$0xff]  ;;  %v55_v14 = vld [vmem:[%s3023_s2 + $0x8] sm:$0xff] }
   0x3   :  { %v248_v12 = vld [vmem:[%s3024_s3] sm:$0xff]  ;;  %v250_v18 = vld [vmem:[%s3024_s3 + $0x10] sm:$0xff]  ;;  %v251_v19 = vld [vmem:[%s3024_s3 + $0x18] sm:$0xff]  ;;  %vm266_vm9 = vcmask 523264   ;;  %vm342_vm10 = vcmask 261120   ;;  %v2507_v59 = vmov 0  }
   0x4   :  { %v31_v5 = vadd.s32 8, %v30_v2  ;;  %vm37_vm2 = vcmp.eq.s32.totalorder %v30_v2, %v1914_v3  ;;  %vm48_vm3 = vcmp.eq.s32.totalorder %v30_v2, %v1917_v4  ;;  %v2306_v15 = vpack.c.bf16 %v249_v13, %v248_v12  ;;  %v57_v20 = vld [vmem:[%s3023_s2 + $0x18] sm:$0xff]  ;;  %v252_v22 = vld [vmem:[%s3024_s3 + $0x20] sm:$0xff]  ;;  %v253_v23 = vld [vmem:[%s3024_s3 + $0x28] sm:$0xff]  ;;  %2433 = vset.pattern.permute.xlu1 %v2507_v59  ;;  %2434 = vset.pattern.permute.xlu0 %v2507_v59 }
   0x5   :  { %vm2294_vm5 = vmpackc.low %vm71_vm1, %vm37_vm2  ;;  %v2309_v21 = vpack.c.bf16 %v251_v19, %v250_v18  ;;  %v2312_v24 = vpack.c.bf16 %v253_v23, %v252_v22  ;;  %v254_v25 = vld [vmem:[%s3024_s3 + $0x30] sm:$0xff]  ;;  %v255_v26 = vld [vmem:[%s3024_s3 + $0x38] sm:$0xff] }
   0x6   :  { %vm38_vm4 = vcmp.eq.s32.totalorder %v31_v5, %v1914_v3  ;;  %vm49_vm6 = vcmp.eq.s32.totalorder %v31_v5, %v1917_v4  ;;  %vm2300_vm7 = vmpackc.low %vm71_vm1, %vm48_vm3  ;;  %v2315_v27 = vpack.c.bf16 %v255_v26, %v254_v25  ;;  %v260_v28 = vld [vmem:[%s3025_s1] sm:$0xff]  ;;  %v563_v42 = vld [vmem:[%s3026_s4 + $0x28] sm:$0xff]  ;;  %v2508_v4 = vmov 2  }
   0x7   :  { %v1916_v7 = vsel %vm38_vm4, 1.0, %v2503_v6  ;;  %v1919_v8 = vsel %vm49_vm6, 1.0, %v2503_v6  ;;  %v562_v29 = vld [vmem:[%s3026_s4 + $0x20] sm:$0xff]  ;;  %v257_v51 = vld [vmem:[%s3024_s3 + $0x48] sm:$0xff]  ;;  %v258_v53 = vld [vmem:[%s3024_s3 + $0x50] sm:$0xff]  ;;  %v2509_v5 = vmov 1  }
   0x8   :  { %v2293_v10 = vpack.c.bf16 %v1916_v7, %v2504_v9  ;;  %v2299_v11 = vpack.c.bf16 %v1919_v8, %v2504_v9  ;;  %v1932_v43 = vld [vmem:[%s3027_s6] ss:$0 sm:$0xff]  ;;  %v259_v54 = vld [vmem:[%s3024_s3 + $0x58] sm:$0xff]  ;;  %v564_v56 = vld [vmem:[%s3026_s4 + $0x30] sm:$0xff] }
   0x9   :  { %v256_v50 = vld [vmem:[%s3024_s3 + $0x40] sm:$0xff]  ;;  %v2321_v55 = vpack.c.bf16 %v259_v54, %v258_v53  ;;  %v565_v57 = vld [vmem:[%s3026_s4 + $0x38] sm:$0xff]  ;;  %v2718_v61 = vld [vmem:[%s3028_s7 + $0x10] sm:$0xff] }
   0xa   :  { %2295 = vmatprep.subr.msk.bf16.mxu0 %vm2294_vm5, %v2293_v10  ;;  %2301 = vmatprep.subr.msk.bf16.mxu1 %vm2300_vm7, %v2299_v11  ;;  %v2318_v52 = vpack.c.bf16 %v257_v51, %v256_v50  ;;  %v558_v58 = vld [vmem:[%s3026_s4] sm:$0xff]  ;;  %v559_v62 = vld [vmem:[%s3026_s4 + $0x8] sm:$0xff]  ;;  %v560_v63 = vld [vmem:[%s3026_s4 + $0x10] sm:$0xff] }
   0xb   :  { %2298 = vmatpush3.bf16.msk.msra.mxu0 %vm2294_vm5, %v2293_v10  ;;  %2304 = vmatpush3.bf16.msk.msra.mxu1 %vm2300_vm7, %v2299_v11  ;;  %v2713_v60 = vld [vmem:[%s3028_s7] sm:$0xff]  ;;  %v2731_v1 = vld [vmem:[%s3028_s7 + $0x8] sm:$0xff]  ;;  %v561_v2 = vld [vmem:[%s3026_s4 + $0x18] sm:$0xff] }
   0xc   :  { %2305 = vmatprep.subr.bf16.mxu0 %v2505_v16  ;;  %2317 = vmatprep.subr.bf16.mxu1 %v2505_v16  ;;  %v2743_v3 = vld [vmem:[%s3028_s7 + $0x18] sm:$0xff]  ;;  %v1935_v19 = vld [vmem:[%s3027_s6 + $0x2] ss:$0 sm:$0xff] }
   0xd   :  { %794 = vperm.xlu1 %2433, %v2713_v60  }
   0xe   :  { %2100 = vmatmul.mubr.msk.f32.vlgmr.msra.gmra.mrb[0].mxu0 %vm58_vm0, %v55_v14  ;;  %2110 = vmatmul.mubr.msk.f32.vlgmr.msra.gmra.mrb[0].mxu1 %vm58_vm0, %v55_v14 }
   0xf   :  { %2307 = vmatpush3.bf16.msra.mxu0 %v2306_v15  ;;  %2112 = vmatprep.mubr.msk.f32.mxu1 %vm58_vm0, %v56_v17 }
  0x10   :  { %2308 = vmatprep.subr.bf16.mxu0 %v2505_v16  ;;  %2102 = vmatprep.mubr.msk.f32.mxu0 %vm58_vm0, %v56_v17  ;;  %v1934_v17 = vld [vmem:[%s3027_s6 + $0x1] ss:$0 sm:$0xff] }
  0x11   :  { %2319 = vmatpush3.bf16.msra.mxu1 %v2318_v52  ;;  %799 = vperm.xlu1 %2433, %v2731_v1  }
  0x12   :  { %2113 = vmatmul.mubr.msk.f32.gmra.mrb[2].mxu1 %vm58_vm0, %v57_v20  ;;  %2103 = vmatmul.mubr.msk.f32.gmra.mrb[2].mxu0 %vm58_vm0, %v57_v20 }
  0x13   :  { %2310 = vmatpush3.bf16.msra.mxu0 %v2309_v21  ;;  %2131 = vmatprep.mubr.msk.f32.mxu0 %vm2506_vm8, %v2503_v6 }
  0x14   :  { %2311 = vmatprep.subr.bf16.mxu0 %v2505_v16  ;;  %2142 = vmatprep.mubr.msk.f32.mxu1 %vm2506_vm8, %v2503_v6 }
  0x15   :  { %2320 = vmatprep.subr.bf16.mxu1 %v2505_v16  ;;  %809 = vperm.xlu1 %2433, %v2743_v3  }
  0x16   :  { %2322 = vmatpush3.bf16.msra.mxu1 %v2321_v55 }
  0x17   :  { %2313 = vmatpush3.bf16.msra.mxu0 %v2312_v24  ;;  %2323 = vmatprep.subr.bf16.mxu1 %v2505_v16 }
  0x18   :  { %2314 = vmatprep.subr.bf16.mxu0 %v2505_v16 }
  0x19   :  { %2435 = vset.pattern.permute.xlu1 %v2509_v5 }
  0x1a   :  { %857 = vperm.xlu1 %2435, %v2731_v1  }
  0x1b   :  { %2316 = vmatpush3.bf16.msra.mxu0 %v2315_v27  ;;  %v475_v27 = vld [vmem:[%s3029_s5] sm:$0xff] }
  0x1e   :  { %2132 = vmatmul.mubr.msk.f32.vlgmr.msra.gmra.mrb[4].mxu0 %vm266_vm9, %v260_v28  ;;  %861 = vperm.xlu1 %2435, %v2718_v61   ;;  %v476_v28 = vld [vmem:[%s3029_s5 + $0x8] sm:$0xff] }
  0x1f   :  { %2164 = vmatprep.mubr.msk.f32.mxu0 %vm342_vm10, %v562_v29  ;;  %v477_v29 = vld [vmem:[%s3029_s5 + $0x10] sm:$0xff] }
  0x22   :  { %2438 = vset.pattern.permute.xlu1 %v2508_v4 }
  0x23   :  { %881 = vperm.xlu1 %2438, %v2718_v61  }
  0x8c   :  { %v795_v23 = vpop.permute.xlu1 %794 }
  0xe1   :  { %v2631_v30 = vpop.f32.mrb[0].mxu0  ;;  %v2633_v31 = vpop.f32.mrb[0].mxu1 }
  0xe2   :  { %v2635_v32 = vpop.f32.mrb[1].mxu0  ;;  %v2637_v33 = vpop.f32.mrb[1].mxu1 }
  0xe3   :  { %v2641_v34 = vpack.c.bf16 %v2631_v30, %v2635_v32  ;;  %v2645_v35 = vpack.c.bf16 %v2633_v31, %v2637_v33 }
  0xe5   :  { %v2647_v36 = vpop.f32.mrb[2].mxu1  ;;  %2330 = vmatprep.subr.bf16.mxu0 %v2645_v35  ;;  %v2650_v37 = vpop.f32.mrb[2].mxu0 }
  0xe6   :  { %v2652_v38 = vpop.f32.mrb[3].mxu1  ;;  %2332 = vmatpush3.bf16.msra.mxu0 %v2645_v35  ;;  %v2655_v39 = vpop.f32.mrb[3].mxu0 }
  0xe7   :  { %v2659_v40 = vpack.c.bf16 %v2647_v36, %v2652_v38  ;;  %v2663_v41 = vpack.c.bf16 %v2650_v37, %v2655_v39 }
  0xe9   :  { %2334 = vmatprep.subr.bf16.mxu0 %v2659_v40 }
  0xea   :  { %2336 = vmatpush3.bf16.msra.mxu0 %v2659_v40 }
  0xeb   :  { %2338 = vmatprep.subr.bf16.mxu0 %v2641_v34 }
  0xed   :  { %2165 = vmatmul.mubr.msk.f32.vlgmr.msra.gmra.mrb[6].mxu0 %vm342_vm10, %v563_v42 }
  0xee   :  { %2340 = vmatpush3.bf16.msra.mxu0 %v2641_v34  ;;  %2167 = vmatprep.mubr.msk.f32.mxu0 %vm342_vm10, %v564_v56 }
  0xef   :  { %2342 = vmatprep.subr.bf16.mxu0 %v2663_v41 }
  0xf1   :  { %v336_v44 = vpop.f32.mrb[4].mxu0  ;;  %2168 = vmatmul.mubr.msk.f32.gmra.mrb[8].mxu0 %vm342_vm10, %v565_v57 }
  0xf2   :  { %v2677_v45 = vadd.f32 %v1932_v43, %v336_v44  ;;  %v2133_v46 = vpop.f32.mrb[5].mxu0  ;;  %2344 = vmatpush3.bf16.msra.mxu0 %v2663_v41  ;;  %2178 = vmatprep.mubr.msk.f32.mxu0 %vm342_vm10, %v558_v58  ;;  %v2324_v44 = vpack.c.bf16 %v476_v28, %v475_v27 }
  0xf4   :  { %v343_v47 = vsel %vm342_vm10, %v2677_v45, 0.0  ;;  %v346_v48 = vmul.f32 %v2677_v45, %v2677_v45 }
  0xf5   :  { %344 = vadd.xlane.f32.xlu0 %v343_v47  ;;  %2179 = vmatmul.mubr.msk.f32.vlgmr.msra.gmra.mrb[6].mxu0 %vm342_vm10, %v559_v62  ;;  %v800_v47 = vpop.permute.xlu1 %799 }
  0xf6   :  { %v347_v49 = vsel %vm342_vm10, %v346_v48, 0.0  ;;  %2181 = vmatprep.mubr.msk.f32.mxu0 %vm342_vm10, %v560_v63 }
  0xf9   :  { %348 = vadd.xlane.f32.xlu0 %v347_v49  ;;  %2182 = vmatmul.mubr.msk.f32.gmra.mrb[8].mxu0 %vm342_vm10, %v561_v2  ;;  %v810_v55 = vpop.permute.xlu1 %809 }
 0x10f   :  { %804 = vperm.xlu0 %2434, %v2718_v61  }
 0x113   :  { %2436 = vset.pattern.permute.xlu0 %v2508_v4 }
 0x114   :  { %873 = vperm.xlu0 %2436, %v2713_v60  }
 0x118   :  { %877 = vperm.xlu0 %2436, %v2731_v1  }
 0x11c   :  { %2437 = vset.pattern.permute.xlu0 %v2509_v5 }
 0x11d   :  { %853 = vperm.xlu0 %2437, %v2713_v60  }
 0x121   :  { %865 = vperm.xlu0 %2437, %v2743_v3  }
 0x182   :  { %v345_v7 = vpop.xlane.xlu0 %344 }
 0x183   :  { %v350_v8 = vmul.f32 0.03125, %v345_v7 }
 0x185   :  { %v352_v10 = vmul.f32 %v350_v8, %v350_v8  ;;  %v354_v14 = vsub.f32 %v2677_v45, %v350_v8  ;;  %v478_v45 = vld [vmem:[%s3029_s5 + $0x18] sm:$0xff] }
 0x186   :  { %v349_v9 = vpop.xlane.xlu0 %348  ;;  %v2327_v49 = vpack.c.bf16 %v478_v45, %v477_v29 }
 0x187   :  { %v351_v11 = vmul.f32 0.03125, %v349_v9 }
 0x189   :  { %v353_v12 = vsub.f32 %v351_v11, %v352_v10 }
 0x18b   :  { %v355_v13 = vadd.f32 1e-05, %v353_v12 }
 0x18d   :  { %2455 = vrsqrt.f32 %v355_v13 }
 0x18e   :  { %v805_v26 = vpop.permute.xlu0 %804 }
 0x193   :  { %v874_v27 = vpop.permute.xlu0 %873 }
 0x197   :  { %v2456_v15 = vpop.eup %2455  ;;  %v878_v28 = vpop.permute.xlu0 %877 }
 0x198   :  { %v357_v18 = vmul.f32 %v2456_v15, %v354_v14 }
 0x19a   :  { %v362_v20 = vmul.f32 %v1934_v17, %v357_v18 }
 0x19c   :  { %v367_v21 = vadd.f32 %v1935_v19, %v362_v20 }
 0x19e   :  { %v368_v22 = vmax.f32 %v367_v21, 0.0 }
 0x1a0   :  { %2143 = vmatmul.mubr.msk.f32.vlgmr.msra.gmra.mrb[4].mxu1 %vm342_vm10, %v368_v22 }
 0x1a1   :  { %2153 = vmatprep.mubr.msk.f32.mxu1 %vm2506_vm8, %v2503_v6  ;;  %2325 = vmatpush3.bf16.msra.mxu1 %v2324_v44 }
 0x1a2   :  { %2326 = vmatprep.subr.bf16.mxu1 %v2505_v16 }
 0x1a5   :  { %2328 = vmatpush3.bf16.msra.mxu1 %v2327_v49  ;;  %v854_v49 = vpop.permute.xlu0 %853 }
 0x1c8   :  { %v2180_v24 = vpop.f32.mrb[6].mxu0 }
 0x1c9   :  { %v773_v25 = vpop.f32.mrb[7].mxu0  ;;  %v813_v50 = vadd.f32 %v2180_v24, %v800_v47 }
 0x1ca   :  { %v812_v42 = vadd.f32 %v795_v23, %v773_v25 }
 0x1cb   :  { %v826_v52 = vmul.f32 %v813_v50, %v813_v50 }
 0x1cc   :  { %v2183_v43 = vpop.f32.mrb[8].mxu0  ;;  %v825_v51 = vmul.f32 %v812_v42, %v812_v42  ;;  %v816_v53 = vadd.f32 %v813_v50, %v812_v42 }
 0x1cd   :  { %v783_v46 = vpop.f32.mrb[9].mxu0  ;;  %v815_v58 = vadd.f32 %v2183_v43, %v810_v55  ;;  %v858_v43 = vpop.permute.xlu1 %857  ;;  %v1936_v55 = vld [vmem:[%s3027_s6 + $0x3] ss:$0 sm:$0xff] }
 0x1ce   :  { %v814_v48 = vadd.f32 %v805_v26, %v783_v46  ;;  %v829_v56 = vadd.f32 %v826_v52, %v825_v51 }
 0x1cf   :  { %v828_v63 = vmul.f32 %v815_v58, %v815_v58 }
 0x1d0   :  { %v827_v54 = vmul.f32 %v814_v48, %v814_v48  ;;  %v817_v57 = vadd.f32 %v816_v53, %v814_v48 }
 0x1d2   :  { %v830_v59 = vadd.f32 %v829_v56, %v827_v54  ;;  %v818_v62 = vadd.f32 %v817_v57, %v815_v58 }
 0x1d4   :  { %v819_v2 = vrot.slane %v818_v62, 4  ;;  %v831_v4 = vadd.f32 %v830_v59, %v828_v63 }
 0x1d6   :  { %v820_v5 = vadd.f32 %v819_v2, %v818_v62  ;;  %v832_v7 = vrot.slane %v831_v4, 4  ;;  %v2510_v2 = vmov 3  }
 0x1d7   :  { %2439 = vset.pattern.permute.xlu0 %v2510_v2 }
 0x1d8   :  { %v821_v8 = vrot.slane %v820_v5, 2  ;;  %v833_v9 = vadd.f32 %v832_v7, %v831_v4  ;;  %1232 = vperm.xlu0 %2439, %v2713_v60   ;;  %v2511_v4 = vmov 4   ;;  %v2513_v7 = vmov 8  }
 0x1da   :  { %v822_v10 = vadd.f32 %v821_v8, %v820_v5  ;;  %v834_v11 = vrot.slane %v833_v9, 2  ;;  %v2512_v5 = vmov 5   ;;  %v2514_v8 = vmov 7  }
 0x1dc   :  { %v823_v12 = vrot.slane %v822_v10, 1  ;;  %v835_v13 = vadd.f32 %v834_v11, %v833_v9  ;;  %1244 = vperm.xlu0 %2439, %v2743_v3   ;;  %v862_v9 = vpop.permute.xlu1 %861 }
 0x1de   :  { %v824_v14 = vadd.f32 %v823_v12, %v822_v10  ;;  %v836_v15 = vrot.slane %v835_v13, 1 }
 0x1e0   :  { %v837_v17 = vadd.f32 %v836_v15, %v835_v13  ;;  %v838_v18 = vmul.f32 0.03125, %v824_v14  ;;  %2442 = vset.pattern.permute.xlu0 %v2511_v4  ;;  %v882_v10 = vpop.permute.xlu1 %881  ;;  %v866_v14 = vpop.permute.xlu0 %865 }
 0x1e1   :  { %1292 = vperm.xlu0 %2442, %v2731_v1  }
 0x1e2   :  { %v839_v19 = vmul.f32 0.03125, %v837_v17  ;;  %v840_v20 = vmul.f32 %v838_v18, %v838_v18  ;;  %v842_v21 = vsub.f32 %v812_v42, %v838_v18  ;;  %v843_v22 = vsub.f32 %v813_v50, %v838_v18 }
 0x1e3   :  { %v845_v23 = vsub.f32 %v815_v58, %v838_v18  ;;  %v844_v24 = vsub.f32 %v814_v48, %v838_v18 }
 0x1e4   :  { %v841_v25 = vsub.f32 %v839_v19, %v840_v20 }
 0x1e5   :  { %1296 = vperm.xlu0 %2442, %v2718_v61  }
 0x1e6   :  { %v846_v26 = vadd.f32 1e-05, %v841_v25 }
 0x1e8   :  { %2457 = vrsqrt.f32 %v846_v26 }
 0x1e9   :  { %2445 = vset.pattern.permute.xlu0 %v2512_v5 }
 0x1ea   :  { %1316 = vperm.xlu0 %2445, %v2718_v61  }
 0x1ee   :  { %2448 = vset.pattern.permute.xlu0 %v2513_v7 }
 0x1ef   :  { %1336 = vperm.xlu0 %2448, %v2731_v1  }
 0x1f2   :  { %v2458_v29 = vpop.eup %2457 }
 0x1f3   :  { %v848_v44 = vmul.f32 %v2458_v29, %v842_v21  ;;  %v849_v45 = vmul.f32 %v2458_v29, %v843_v22  ;;  %v2777_v46 = vmul.f32 %v2458_v29, %v845_v23  ;;  %v850_v47 = vmul.f32 %v2458_v29, %v844_v24  ;;  %2449 = vset.pattern.permute.xlu0 %v2514_v8 }
 0x1f4   :  { %897 = vperm.xlu0 %2449, %v2713_v60  }
 0x1f5   :  { %v868_v51 = vmul.f32 %v854_v49, %v848_v44  ;;  %v869_v52 = vmul.f32 %v858_v43, %v849_v45  ;;  %v870_v13 = vmul.f32 %v862_v9, %v850_v47  ;;  %v871_v19 = vmul.f32 %v866_v14, %v2777_v46  ;;  %v1938_v43 = vld [vmem:[%s3027_s6 + $0x4] ss:$0 sm:$0xff]  ;;  %v1939_v45 = vld [vmem:[%s3027_s6 + $0x5] ss:$0 sm:$0xff] }
 0x1f7   :  { %v888_v53 = vadd.f32 %v874_v27, %v868_v51  ;;  %v889_v42 = vadd.f32 %v878_v28, %v869_v52  ;;  %v890_v20 = vadd.f32 %v882_v10, %v870_v13  ;;  %v582_v51 = vld [vmem:[%s3024_s3 + $0x60] sm:$0xff]  ;;  %v583_v52 = vld [vmem:[%s3024_s3 + $0x68] sm:$0xff] }
 0x1f8   :  { %909 = vperm.xlu0 %2449, %v2743_v3  }
 0x1f9   :  { %v892_v50 = vmax.f32 %v888_v53, 0.0  ;;  %v893_v54 = vmax.f32 %v889_v42, 0.0  ;;  %v894_v25 = vmax.f32 %v890_v20, 0.0  ;;  %v584_v53 = vld [vmem:[%s3024_s3 + $0x70] sm:$0xff]  ;;  %v585_v42 = vld [vmem:[%s3024_s3 + $0x78] sm:$0xff] }
 0x1fb   :  { %v2779_v48 = vpack.c.bf16 %v893_v54, %v892_v50  ;;  %v570_v50 = vld [vmem:[%s3026_s4 + $0x60] sm:$0xff]  ;;  %v572_v54 = vld [vmem:[%s3026_s4 + $0x70] sm:$0xff] }
 0x1fd   :  { %2346 = vmatprep.subr.bf16.mxu1 %v2779_v48 }
 0x273   :  { %v443_v56 = vpop.f32.mrb[4].mxu1 }
 0x274   :  { %v2785_v57 = vadd.f32 %v1936_v55, %v443_v56  ;;  %v2144_v58 = vpop.f32.mrb[5].mxu1  ;;  %v568_v55 = vld [vmem:[%s3026_s4 + $0x50] sm:$0xff]  ;;  %v569_v56 = vld [vmem:[%s3026_s4 + $0x58] sm:$0xff] }
 0x275   :  { %v586_v58 = vld [vmem:[%s3024_s3 + $0x80] sm:$0xff] }
 0x276   :  { %v449_v59 = vsel %vm342_vm10, %v2785_v57, 0.0  ;;  %v452_v62 = vmul.f32 %v2785_v57, %v2785_v57  ;;  %2234 = vmatprep.mubr.msk.f32.mxu0 %vm342_vm10, %v586_v58 }
 0x277   :  { %450 = vadd.xlane.f32.xlu1 %v449_v59 }
 0x278   :  { %v453_v63 = vsel %vm342_vm10, %v452_v62, 0.0 }
 0x27b   :  { %454 = vadd.xlane.f32.xlu1 %v453_v63  ;;  %v1233_v63 = vpop.permute.xlu0 %1232 }
 0x28c   :  { %885 = vperm.xlu1 %2438, %v2743_v3  }
 0x290   :  { %2440 = vset.pattern.permute.xlu1 %v2510_v2 }
 0x291   :  { %1236 = vperm.xlu1 %2440, %v2731_v1  }
 0x295   :  { %1240 = vperm.xlu1 %2440, %v2718_v61  }
 0x299   :  { %2441 = vset.pattern.permute.xlu1 %v2511_v4 }
 0x29a   :  { %1288 = vperm.xlu1 %2441, %v2713_v60  }
 0x29e   :  { %2443 = vset.pattern.permute.xlu1 %v2512_v5 }
 0x29f   :  { %1308 = vperm.xlu1 %2443, %v2713_v60  }
 0x2a3   :  { %1312 = vperm.xlu1 %2443, %v2731_v1  }
 0x2a7   :  { %2444 = vset.pattern.permute.xlu1 %v2511_v4  ;;  %v1245_v4 = vpop.permute.xlu0 %1244 }
 0x2a8   :  { %1300 = vperm.xlu1 %2444, %v2743_v3  }
 0x2ac   :  { %2446 = vset.pattern.permute.xlu1 %v2512_v5 }
 0x2ad   :  { %1320 = vperm.xlu1 %2446, %v2743_v3  }
 0x2b1   :  { %2447 = vset.pattern.permute.xlu1 %v2513_v7  ;;  %v2891_v7 = vpop.permute.xlu0 %1292 }
 0x2b2   :  { %1332 = vperm.xlu1 %2447, %v2713_v60  }
 0x2b5   :  { %v2895_v9 = vpop.permute.xlu0 %1296 }
 0x2b6   :  { %1340 = vperm.xlu1 %2447, %v2718_v61  }
 0x2ba   :  { %1344 = vperm.xlu1 %2447, %v2743_v3  }
 0x2be   :  { %2450 = vset.pattern.permute.xlu1 %v2514_v8 }
 0x2bf   :  { %901 = vperm.xlu1 %2450, %v2731_v1  }
 0x2c3   :  { %905 = vperm.xlu1 %2450, %v2718_v61  }
 0x304   :  { %v451_v11 = vpop.xlane.xlu1 %450 }
 0x305   :  { %v456_v12 = vmul.f32 0.03125, %v451_v11  ;;  %v2899_v11 = vpop.permute.xlu0 %1316 }
 0x307   :  { %v458_v17 = vmul.f32 %v456_v12, %v456_v12  ;;  %v460_v28 = vsub.f32 %v2785_v57, %v456_v12 }
 0x308   :  { %v455_v15 = vpop.xlane.xlu1 %454 }
 0x309   :  { %v457_v18 = vmul.f32 0.03125, %v455_v15  ;;  %v2903_v13 = vpop.permute.xlu0 %1336 }
 0x30b   :  { %v459_v21 = vsub.f32 %v457_v18, %v458_v17 }
 0x30c   :  { %v886_v22 = vpop.permute.xlu1 %885 }
 0x30d   :  { %v461_v23 = vadd.f32 1e-05, %v459_v21  ;;  %v891_v24 = vadd.f32 %v886_v22, %v871_v19  ;;  %v898_v18 = vpop.permute.xlu0 %897 }
 0x30f   :  { %2459 = vrsqrt.f32 %v461_v23  ;;  %v895_v26 = vmax.f32 %v891_v24, 0.0 }
 0x311   :  { %v2349_v27 = vpack.c.bf16 %v895_v26, %v894_v25  ;;  %v910_v24 = vpop.permute.xlu0 %909 }
 0x319   :  { %v2460_v29 = vpop.eup %2459 }
 0x31a   :  { %v463_v44 = vmul.f32 %v2460_v29, %v460_v28 }
 0x31c   :  { %v468_v46 = vmul.f32 %v1938_v43, %v463_v44 }
 0x31e   :  { %v473_v47 = vadd.f32 %v1939_v45, %v468_v46 }
 0x320   :  { %v474_v49 = vmax.f32 %v473_v47, 0.0 }
 0x322   :  { %2154 = vmatmul.mubr.msk.f32.vlgmr.msra.gmra.mrb[6].mxu1 %vm342_vm10, %v474_v49 }
 0x323   :  { %2348 = vmatpush3.bf16.msra.mxu1 %v2779_v48  ;;  %2192 = vmatprep.mubr.msk.f32.mxu1 %vm342_vm10, %v582_v51  ;;  %v566_v48 = vld [vmem:[%s3026_s4 + $0x40] sm:$0xff] }
 0x324   :  { %2350 = vmatprep.subr.bf16.mxu1 %v2349_v27 }
 0x327   :  { %2352 = vmatpush3.bf16.msra.mxu1 %v2349_v27 }
 0x328   :  { %2354 = vmatprep.subr.bf16.mxu1 %v2641_v34 }
 0x32a   :  { %2193 = vmatmul.mubr.msk.f32.vlgmr.msra.gmra.mrb[8].mxu1 %vm342_vm10, %v583_v52 }
 0x32b   :  { %2356 = vmatpush3.bf16.msra.mxu1 %v2641_v34  ;;  %2195 = vmatprep.mubr.msk.f32.mxu1 %vm342_vm10, %v584_v53  ;;  %v571_v34 = vld [vmem:[%s3026_s4 + $0x68] sm:$0xff] }
 0x32c   :  { %2358 = vmatprep.subr.bf16.mxu1 %v2663_v41 }
 0x32e   :  { %2196 = vmatmul.mubr.msk.f32.gmra.mrb[10].mxu1 %vm342_vm10, %v585_v42 }
 0x32f   :  { %2360 = vmatpush3.bf16.msra.mxu1 %v2663_v41  ;;  %2206 = vmatprep.mubr.msk.f32.mxu1 %vm342_vm10, %v570_v50  ;;  %v573_v41 = vld [vmem:[%s3026_s4 + $0x78] sm:$0xff] }
 0x330   :  { %2362 = vmatprep.subr.bf16.mxu1 %v2645_v35 }
 0x332   :  { %2207 = vmatmul.mubr.msk.f32.vlgmr.msra.gmra.mrb[12].mxu1 %vm342_vm10, %v571_v34 }
 0x333   :  { %2364 = vmatpush3.bf16.msra.mxu1 %v2645_v35  ;;  %2209 = vmatprep.mubr.msk.f32.mxu1 %vm342_vm10, %v572_v54  ;;  %v567_v35 = vld [vmem:[%s3026_s4 + $0x48] sm:$0xff] }
 0x334   :  { %2366 = vmatprep.subr.bf16.mxu1 %v2659_v40 }
 0x336   :  { %2210 = vmatmul.mubr.msk.f32.gmra.mrb[14].mxu1 %vm342_vm10, %v573_v41 }
 0x337   :  { %2368 = vmatpush3.bf16.msra.mxu1 %v2659_v40  ;;  %2220 = vmatprep.mubr.msk.f32.mxu1 %vm342_vm10, %v566_v48  ;;  %v1237_v40 = vpop.permute.xlu1 %1236 }
 0x33a   :  { %2221 = vmatmul.mubr.msk.f32.vlgmr.msra.gmra.mrb[12].mxu1 %vm342_vm10, %v567_v35 }
 0x33b   :  { %2223 = vmatprep.mubr.msk.f32.mxu1 %vm342_vm10, %v568_v55  ;;  %v1241_v57 = vpop.permute.xlu1 %1240 }
 0x33e   :  { %2224 = vmatmul.mubr.msk.f32.gmra.mrb[14].mxu1 %vm342_vm10, %v569_v56 }
 0x33f   :  { %v2883_v59 = vpop.permute.xlu1 %1288 }
 0x343   :  { %v2885_v62 = vpop.permute.xlu1 %1308 }
 0x347   :  { %v2887_v2 = vpop.permute.xlu1 %1312 }
 0x34b   :  { %v2889_v5 = vpop.permute.xlu1 %1300 }
 0x34f   :  { %v2893_v8 = vpop.permute.xlu1 %1320 }
 0x353   :  { %v2897_v10 = vpop.permute.xlu1 %1332 }
 0x357   :  { %v2901_v12 = vpop.permute.xlu1 %1340 }
 0x35b   :  { %v2905_v14 = vpop.permute.xlu1 %1344 }
 0x35f   :  { %v902_v19 = vpop.permute.xlu1 %901 }
 0x363   :  { %v906_v26 = vpop.permute.xlu1 %905 }
 0x3f5   :  { %v2907_v15 = vpop.f32.mrb[6].mxu1 }
 0x3f6   :  { %v2155_v17 = vpop.f32.mrb[7].mxu1 }
 0x3fd   :  { %v2194_v20 = vpop.f32.mrb[8].mxu1 }
 0x3fe   :  { %v996_v21 = vadd.f32 %v2194_v20, %v902_v19  ;;  %v990_v22 = vpop.f32.mrb[9].mxu1 }
 0x3ff   :  { %v991_v23 = vadd.f32 %v990_v22, %v898_v18 }
 0x400   :  { %v1955_v25 = vmul.f32 -1.442695, %v996_v21 }
 0x401   :  { %v1954_v27 = vmul.f32 -1.442695, %v991_v23  ;;  %v2197_v28 = vpop.f32.mrb[10].mxu1 }
 0x402   :  { %2461 = vpow2.f32 %v1955_v25  ;;  %v1006_v29 = vadd.f32 %v2197_v28, %v910_v24  ;;  %v1000_v43 = vpop.f32.mrb[11].mxu1 }
 0x403   :  { %2463 = vpow2.f32 %v1954_v27  ;;  %v1001_v44 = vadd.f32 %v1000_v43, %v906_v26 }
 0x404   :  { %v1957_v45 = vmul.f32 -1.442695, %v1006_v29 }
 0x405   :  { %v1956_v46 = vmul.f32 -1.442695, %v1001_v44 }
 0x406   :  { %2465 = vpow2.f32 %v1957_v45 }
 0x407   :  { %2467 = vpow2.f32 %v1956_v46 }
 0x40c   :  { %v2462_v47 = vpop.eup %2461 }
 0x40d   :  { %v2464_v49 = vpop.eup %2463  ;;  %v1022_v51 = vadd.f32 1.0, %v2462_v47  ;;  %v2222_v52 = vpop.f32.mrb[12].mxu1 }
 0x40e   :  { %v1021_v53 = vadd.f32 1.0, %v2464_v49  ;;  %v1248_v42 = vadd.f32 %v2222_v52, %v1237_v40  ;;  %v1212_v50 = vpop.f32.mrb[13].mxu1 }
 0x40f   :  { %2469 = vrcp.f32 %v1022_v51  ;;  %v1247_v34 = vadd.f32 %v1233_v63, %v1212_v50 }
 0x410   :  { %v2466_v54 = vpop.eup %2465  ;;  %2471 = vrcp.f32 %v1021_v53  ;;  %v1261_v41 = vmul.f32 %v1248_v42, %v1248_v42 }
 0x411   :  { %v2468_v48 = vpop.eup %2467  ;;  %v1024_v35 = vadd.f32 1.0, %v2466_v54  ;;  %v1251_v55 = vadd.f32 %v1248_v42, %v1247_v34  ;;  %v1260_v56 = vmul.f32 %v1247_v34, %v1247_v34  ;;  %v2225_v58 = vpop.f32.mrb[14].mxu1 }
 0x412   :  { %v1023_v17 = vadd.f32 1.0, %v2468_v48  ;;  %v1222_v18 = vpop.f32.mrb[15].mxu1  ;;  %v1250_v20 = vadd.f32 %v2225_v58, %v1245_v4 }
 0x413   :  { %2473 = vrcp.f32 %v1024_v35  ;;  %v1264_v19 = vadd.f32 %v1261_v41, %v1260_v56  ;;  %v1249_v21 = vadd.f32 %v1241_v57, %v1222_v18 }
 0x414   :  { %2475 = vrcp.f32 %v1023_v17  ;;  %v1263_v23 = vmul.f32 %v1250_v20, %v1250_v20 }
 0x415   :  { %v1252_v22 = vadd.f32 %v1251_v55, %v1249_v21  ;;  %v1262_v40 = vmul.f32 %v1249_v21, %v1249_v21 }
 0x417   :  { %v1253_v24 = vadd.f32 %v1252_v22, %v1250_v20  ;;  %v1265_v63 = vadd.f32 %v1264_v19, %v1262_v40 }
 0x419   :  { %v2470_v25 = vpop.eup %2469  ;;  %v1254_v26 = vrot.slane %v1253_v24, 4  ;;  %v1266_v27 = vadd.f32 %v1265_v63, %v1263_v23 }
 0x41a   :  { %v2472_v28 = vpop.eup %2471  ;;  %v1034_v29 = vmul.f32 %v2470_v25, %v2631_v30 }
 0x41b   :  { %v1255_v43 = vadd.f32 %v1254_v26, %v1253_v24  ;;  %v1267_v44 = vrot.slane %v1266_v27, 4  ;;  %v1033_v45 = vmul.f32 %v2472_v28, %v2635_v32 }
 0x41d   :  { %v2474_v46 = vpop.eup %2473  ;;  %v1256_v47 = vrot.slane %v1255_v43, 2  ;;  %v1268_v4 = vadd.f32 %v1267_v44, %v1266_v27  ;;  %v2911_v57 = vpack.c.bf16 %v1034_v29, %v1033_v45 }
 0x41e   :  { %v2476_v49 = vpop.eup %2475  ;;  %v1036_v51 = vmul.f32 %v2474_v46, %v2650_v37 }
 0x41f   :  { %v1257_v52 = vadd.f32 %v1256_v47, %v1255_v43  ;;  %v1269_v53 = vrot.slane %v1268_v4, 2  ;;  %v1035_v50 = vmul.f32 %v2476_v49, %v2655_v39 }
 0x421   :  { %v1258_v54 = vrot.slane %v1257_v52, 1  ;;  %v1270_v41 = vadd.f32 %v1269_v53, %v1268_v4  ;;  %v2915_v48 = vpack.c.bf16 %v1036_v51, %v1035_v50 }
 0x423   :  { %v1259_v30 = vadd.f32 %v1258_v54, %v1257_v52  ;;  %v1271_v35 = vrot.slane %v1270_v41, 1 }
 0x425   :  { %v1272_v55 = vadd.f32 %v1271_v35, %v1270_v41  ;;  %v1273_v32 = vmul.f32 0.03125, %v1259_v30 }
 0x427   :  { %v1274_v56 = vmul.f32 0.03125, %v1272_v55  ;;  %v1275_v58 = vmul.f32 %v1273_v32, %v1273_v32  ;;  %v1279_v17 = vsub.f32 %v1249_v21, %v1273_v32  ;;  %v1277_v18 = vsub.f32 %v1247_v34, %v1273_v32 }
 0x428   :  { %v1278_v19 = vsub.f32 %v1248_v42, %v1273_v32  ;;  %v1280_v22 = vsub.f32 %v1250_v20, %v1273_v32 }
 0x429   :  { %v1276_v40 = vsub.f32 %v1274_v56, %v1275_v58 }
 0x42b   :  { %v1281_v37 = vadd.f32 1e-05, %v1276_v40 }
 0x42d   :  { %2477 = vrsqrt.f32 %v1281_v37 }
 0x437   :  { %v2478_v23 = vpop.eup %2477 }
 0x438   :  { %v1285_v24 = vmul.f32 %v2478_v23, %v1279_v17  ;;  %v1283_v39 = vmul.f32 %v2478_v23, %v1277_v18  ;;  %v1284_v63 = vmul.f32 %v2478_v23, %v1278_v19  ;;  %v1286_v25 = vmul.f32 %v2478_v23, %v1280_v22 }
 0x43a   :  { %v1303_v26 = vmul.f32 %v2883_v59, %v1283_v39  ;;  %v1304_v27 = vmul.f32 %v2891_v7, %v1284_v63  ;;  %v1305_v28 = vmul.f32 %v2895_v9, %v1285_v24  ;;  %v1306_v29 = vmul.f32 %v2889_v5, %v1286_v25  ;;  %v589_v5 = vld [vmem:[%s3024_s3 + $0x98] sm:$0xff]  ;;  %v578_v7 = vld [vmem:[%s3026_s4 + $0xa0] sm:$0xff]  ;;  %v579_v25 = vld [vmem:[%s3026_s4 + $0xa8] sm:$0xff] }
 0x43c   :  { %v1323_v34 = vadd.f32 %v2885_v62, %v1303_v26  ;;  %v1324_v42 = vadd.f32 %v2887_v2, %v1304_v27  ;;  %v1325_v20 = vadd.f32 %v2899_v11, %v1305_v28  ;;  %v1326_v21 = vadd.f32 %v2893_v8, %v1306_v29  ;;  %v587_v62 = vld [vmem:[%s3024_s3 + $0x88] sm:$0xff]  ;;  %v588_v2 = vld [vmem:[%s3024_s3 + $0x90] sm:$0xff]  ;;  %v577_v26 = vld [vmem:[%s3026_s4 + $0x98] sm:$0xff] }
 0x43d   :  { %v2515_v8 = vmov 6   ;;  %v2516_v27 = vmov 9  }
 0x43e   :  { %v1327_v43 = vmax.f32 %v1323_v34, 0.0  ;;  %v1328_v44 = vmax.f32 %v1324_v42, 0.0  ;;  %v1329_v45 = vmax.f32 %v1325_v20, 0.0  ;;  %v1330_v46 = vmax.f32 %v1326_v21, 0.0  ;;  %2451 = vset.pattern.permute.xlu1 %v2515_v8  ;;  %2452 = vset.pattern.permute.xlu0 %v2515_v8  ;;  %v593_v8 = vld [vmem:[%s3024_s3 + $0xb8] sm:$0xff] }
 0x43f   :  { %1667 = vperm.xlu1 %2451, %v2713_v60   ;;  %1671 = vperm.xlu0 %2452, %v2731_v1  }
 0x440   :  { %v2369_v47 = vpack.c.bf16 %v1328_v44, %v1327_v43  ;;  %v2373_v59 = vpack.c.bf16 %v1330_v46, %v1329_v45 }
 0x442   :  { %2370 = vmatprep.subr.bf16.mxu0 %v2369_v47 }
 0x443   :  { %2372 = vmatpush3.bf16.msra.mxu0 %v2369_v47  ;;  %1675 = vperm.xlu1 %2451, %v2718_v61  }
 0x444   :  { %2374 = vmatprep.subr.bf16.mxu0 %v2373_v59  ;;  %2453 = vset.pattern.permute.xlu0 %v2516_v27 }
 0x445   :  { %1691 = vperm.xlu0 %2453, %v2713_v60  }
 0x447   :  { %2376 = vmatpush3.bf16.msra.mxu0 %v2373_v59  ;;  %1679 = vperm.xlu1 %2451, %v2743_v3  }
 0x449   :  { %1703 = vperm.xlu0 %2453, %v2743_v3   ;;  %v591_v3 = vld [vmem:[%s3024_s3 + $0xa8] sm:$0xff] }
 0x44a   :  { %2235 = vmatmul.mubr.msk.f32.vlgmr.msra.gmra.mrb[10].mxu0 %vm342_vm10, %v587_v62 }
 0x44b   :  { %2237 = vmatprep.mubr.msk.f32.mxu0 %vm342_vm10, %v588_v2  ;;  %2454 = vset.pattern.permute.xlu1 %v2516_v27 }
 0x44c   :  { %1695 = vperm.xlu1 %2454, %v2731_v1  }
 0x44e   :  { %2238 = vmatmul.mubr.msk.f32.gmra.mrb[12].mxu0 %vm342_vm10, %v589_v5 }
 0x44f   :  { %2248 = vmatprep.mubr.msk.f32.mxu0 %vm342_vm10, %v578_v7  ;;  %v592_v7 = vld [vmem:[%s3024_s3 + $0xb0] sm:$0xff] }
 0x450   :  { %1699 = vperm.xlu1 %2454, %v2718_v61  }
 0x4be   :  { %v1668_v28 = vpop.permute.xlu1 %1667  ;;  %v1672_v34 = vpop.permute.xlu0 %1671 }
 0x4c2   :  { %v1676_v29 = vpop.permute.xlu1 %1675 }
 0x4c6   :  { %v1680_v45 = vpop.permute.xlu1 %1679 }
 0x51d   :  { %v2236_v9 = vpop.f32.mrb[10].mxu0 }
 0x51e   :  { %v1431_v11 = vadd.f32 %v2236_v9, %v2903_v13  ;;  %v1425_v4 = vpop.f32.mrb[11].mxu0  ;;  %v1804_v9 = vand.u32 127, %v29_v0 }
 0x51f   :  { %v1426_v49 = vadd.f32 %v1425_v4, %v2897_v10  ;;  %v1696_v4 = vpop.permute.xlu1 %1695 }
 0x520   :  { %v1971_v51 = vmul.f32 -1.442695, %v1431_v11  ;;  %v1692_v11 = vpop.permute.xlu0 %1691  ;;  %vm1805_vm11 = vcmp.lt.s32.totalorder %v1804_v9, 16 }
 0x521   :  { %v1970_v52 = vmul.f32 -1.442695, %v1426_v49  ;;  %v2239_v53 = vpop.f32.mrb[12].mxu0 }
 0x522   :  { %2479 = vpow2.f32 %v1971_v51  ;;  %v1441_v50 = vadd.f32 %v2239_v53, %v2905_v14  ;;  %v1435_v54 = vpop.f32.mrb[13].mxu0 }
 0x523   :  { %2481 = vpow2.f32 %v1970_v52  ;;  %v1436_v41 = vadd.f32 %v1435_v54, %v2901_v12 }
 0x524   :  { %v1973_v30 = vmul.f32 -1.442695, %v1441_v50  ;;  %v1704_v54 = vpop.permute.xlu0 %1703 }
 0x525   :  { %v1972_v35 = vmul.f32 -1.442695, %v1436_v41 }
 0x526   :  { %2483 = vpow2.f32 %v1973_v30 }
 0x527   :  { %2485 = vpow2.f32 %v1972_v35 }
 0x52c   :  { %v2480_v55 = vpop.eup %2479 }
 0x52d   :  { %v2482_v32 = vpop.eup %2481  ;;  %v1457_v13 = vadd.f32 1.0, %v2480_v55  ;;  %v1700_v55 = vpop.permute.xlu1 %1699 }
 0x52e   :  { %v1456_v56 = vadd.f32 1.0, %v2482_v32 }
 0x52f   :  { %2487 = vrcp.f32 %v1457_v13 }
 0x530   :  { %v2484_v10 = vpop.eup %2483  ;;  %2489 = vrcp.f32 %v1456_v56 }
 0x531   :  { %v2486_v58 = vpop.eup %2485  ;;  %v1459_v17 = vadd.f32 1.0, %v2484_v10 }
 0x532   :  { %v1458_v18 = vadd.f32 1.0, %v2486_v58 }
 0x533   :  { %2491 = vrcp.f32 %v1459_v17 }
 0x534   :  { %2493 = vrcp.f32 %v1458_v18 }
 0x539   :  { %v2488_v14 = vpop.eup %2487 }
 0x53a   :  { %v2490_v19 = vpop.eup %2489  ;;  %v1469_v12 = vmul.f32 %v2488_v14, %v2633_v31  ;;  %v580_v31 = vld [vmem:[%s3026_s4 + $0xb0] sm:$0xff] }
 0x53b   :  { %v1468_v22 = vmul.f32 %v2490_v19, %v2637_v33  ;;  %v581_v33 = vld [vmem:[%s3026_s4 + $0xb8] sm:$0xff] }
 0x53d   :  { %v2492_v40 = vpop.eup %2491  ;;  %v2377_v37 = vpack.c.bf16 %v1469_v12, %v1468_v22 }
 0x53e   :  { %v2494_v23 = vpop.eup %2493  ;;  %v1471_v24 = vmul.f32 %v2492_v40, %v2647_v36  ;;  %v574_v36 = vld [vmem:[%s3026_s4 + $0x80] sm:$0xff] }
 0x53f   :  { %2378 = vmatprep.subr.bf16.mxu0 %v2377_v37  ;;  %v1470_v39 = vmul.f32 %v2494_v23, %v2652_v38  ;;  %v575_v38 = vld [vmem:[%s3026_s4 + $0x88] sm:$0xff] }
 0x540   :  { %2380 = vmatpush3.bf16.msra.mxu0 %v2377_v37 }
 0x541   :  { %v2381_v63 = vpack.c.bf16 %v1471_v24, %v1470_v39 }
 0x543   :  { %2382 = vmatprep.subr.bf16.mxu0 %v2381_v63 }
 0x544   :  { %2384 = vmatpush3.bf16.msra.mxu0 %v2381_v63 }
 0x545   :  { %2386 = vmatprep.subr.bf16.mxu0 %v2911_v57 }
 0x547   :  { %2249 = vmatmul.mubr.msk.f32.vlgmr.msra.gmra.mrb[14].mxu0 %vm342_vm10, %v579_v25 }
 0x548   :  { %2388 = vmatpush3.bf16.msra.mxu0 %v2911_v57  ;;  %2251 = vmatprep.mubr.msk.f32.mxu0 %vm342_vm10, %v580_v31  ;;  %v576_v57 = vld [vmem:[%s3026_s4 + $0x90] sm:$0xff] }
 0x549   :  { %2390 = vmatprep.subr.bf16.mxu0 %v2915_v48 }
 0x54b   :  { %2252 = vmatmul.mubr.msk.f32.gmra.mrb[16].mxu0 %vm342_vm10, %v581_v33 }
 0x54c   :  { %2392 = vmatpush3.bf16.msra.mxu0 %v2915_v48  ;;  %2262 = vmatprep.mubr.msk.f32.mxu0 %vm342_vm10, %v574_v36  ;;  %v590_v48 = vld [vmem:[%s3024_s3 + $0xa0] sm:$0xff] }
 0x54d   :  { %2276 = vmatprep.mubr.msk.f32.mxu1 %vm342_vm10, %v590_v48  ;;  %v1940_v36 = vld [vmem:[%s3027_s6 + $0x6] ss:$0 sm:$0xff] }
 0x54e   :  { %v554_v48 = vadd.f32 %v1940_v36, %v2907_v15 }
 0x54f   :  { %2263 = vmatmul.mubr.msk.f32.vlgmr.msra.gmra.mrb[14].mxu0 %vm342_vm10, %v575_v38 }
 0x550   :  { %2265 = vmatprep.mubr.msk.f32.mxu0 %vm342_vm10, %v576_v57 }
 0x553   :  { %2266 = vmatmul.mubr.msk.f32.gmra.mrb[16].mxu0 %vm342_vm10, %v577_v26 }
 0x622   :  { %v2264_v42 = vpop.f32.mrb[14].mxu0 }
 0x623   :  { %v1683_v20 = vadd.f32 %v2264_v42, %v1672_v34  ;;  %v1647_v21 = vpop.f32.mrb[15].mxu0 }
 0x624   :  { %v1682_v43 = vadd.f32 %v1668_v28, %v1647_v21  ;;  %v557_v28 = vmax.f32 %v554_v48, 0.0 }
 0x625   :  { %v1687_v44 = vmax.f32 %v1683_v20, 0.0 }
 0x626   :  { %v1686_v46 = vmax.f32 %v1682_v43, 0.0  ;;  %v2267_v47 = vpop.f32.mrb[16].mxu0 }
 0x627   :  { %v1685_v59 = vadd.f32 %v2267_v47, %v1680_v45  ;;  %v1657_v62 = vpop.f32.mrb[17].mxu0 }
 0x628   :  { %v2393_v60 = vpack.c.bf16 %v1687_v44, %v1686_v46  ;;  %v1684_v2 = vadd.f32 %v1676_v29, %v1657_v62 }
 0x629   :  { %v1689_v1 = vmax.f32 %v1685_v59, 0.0 }
 0x62a   :  { %v1688_v5 = vmax.f32 %v1684_v2, 0.0  ;;  %2394 = vmatprep.subr.bf16.mxu1 %v2393_v60 }
 0x62b   :  { %2396 = vmatpush3.bf16.msra.mxu1 %v2393_v60 }
 0x62c   :  { %v2397_v61 = vpack.c.bf16 %v1689_v1, %v1688_v5 }
 0x62e   :  { %2398 = vmatprep.subr.bf16.mxu1 %v2397_v61 }
 0x62f   :  { %2400 = vmatpush3.bf16.msra.mxu1 %v2397_v61 }
 0x630   :  { %2401 = vmatprep.subr.bf16.mxu1 %v2505_v16 }
 0x632   :  { %2277 = vmatmul.mubr.msk.f32.vlgmr.msra.gmra.mrb[16].mxu1 %vm342_vm10, %v591_v3 }
 0x633   :  { %2279 = vmatprep.mubr.msk.f32.mxu1 %vm342_vm10, %v592_v7 }
 0x636   :  { %2280 = vmatmul.mubr.msk.f32.gmra.mrb[18].mxu1 %vm342_vm10, %v593_v8 }
 0x637   :  { %2290 = vmatprep.mubr.msk.f32.mxu1 %vm2506_vm8, %v2503_v6 }
 0x705   :  { %v2278_v49 = vpop.f32.mrb[16].mxu1 }
 0x706   :  { %v1790_v51 = vadd.f32 %v2278_v49, %v1696_v4  ;;  %v1784_v52 = vpop.f32.mrb[17].mxu1 }
 0x707   :  { %v1785_v53 = vadd.f32 %v1784_v52, %v1692_v11 }
 0x708   :  { %v1809_v50 = vsel %vm1805_vm11, %v1790_v51, 0.0 }
 0x709   :  { %v2281_v41 = vpop.f32.mrb[18].mxu1  ;;  %v1813_v30 = vmul.f32 %v1809_v50, %v1809_v50  ;;  %v1808_v35 = vsel %vm1805_vm11, %v1785_v53, 0.0 }
 0x70a   :  { %v1800_v32 = vadd.f32 %v2281_v41, %v1704_v54  ;;  %v1794_v13 = vpop.f32.mrb[19].mxu1  ;;  %v1812_v6 = vmul.f32 %v1808_v35, %v1808_v35 }
 0x70b   :  { %v1795_v56 = vadd.f32 %v1794_v13, %v1700_v55  ;;  %1818 = vadd.xlane.f32.xlu0 %v1813_v30 }
 0x70c   :  { %1816 = vadd.xlane.f32.xlu1 %v1812_v6  ;;  %v1811_v0 = vsel %vm1805_vm11, %v1800_v32, 0.0 }
 0x70d   :  { %v1810_v10 = vsel %vm1805_vm11, %v1795_v56, 0.0  ;;  %v1815_v58 = vmul.f32 %v1811_v0, %v1811_v0 }
 0x70e   :  { %v1814_v17 = vmul.f32 %v1810_v10, %v1810_v10 }
 0x710   :  { %1820 = vadd.xlane.f32.xlu0 %v1814_v17  ;;  %1822 = vadd.xlane.f32.xlu1 %v1815_v58 }
 0x798   :  { %v1819_v18 = vpop.xlane.xlu0 %1818 }
 0x799   :  { %v1825_v14 = vmax.f32 %v1819_v18, 1e-24  ;;  %v1817_v19 = vpop.xlane.xlu1 %1816 }
 0x79a   :  { %v1824_v12 = vmax.f32 %v1817_v19, 1e-24 }
 0x79b   :  { %2495 = vrsqrt.f32 %v1825_v14 }
 0x79c   :  { %2497 = vrsqrt.f32 %v1824_v12 }
 0x79d   :  { %v1821_v22 = vpop.xlane.xlu0 %1820  ;;  %v1823_v40 = vpop.xlane.xlu1 %1822 }
 0x79e   :  { %v1826_v37 = vmax.f32 %v1821_v22, 1e-24  ;;  %v1827_v23 = vmax.f32 %v1823_v40, 1e-24 }
 0x7a0   :  { %2499 = vrsqrt.f32 %v1826_v37 }
 0x7a1   :  { %2501 = vrsqrt.f32 %v1827_v23 }
 0x7a5   :  { %v2496_v24 = vpop.eup %2495 }
 0x7a6   :  { %v2498_v39 = vpop.eup %2497  ;;  %v1833_v63 = vmul.f32 %v2496_v24, %v1809_v50 }
 0x7a7   :  { %v1832_v25 = vmul.f32 %v2498_v39, %v1808_v35 }
 0x7a9   :  { %v2402_v31 = vpack.c.bf16 %v1833_v63, %v1832_v25 }
 0x7aa   :  { %v2500_v33 = vpop.eup %2499 }
 0x7ab   :  { %v2502_v38 = vpop.eup %2501  ;;  %2403 = vmatpush3.bf16.msra.mxu1 %v2402_v31  ;;  %v1834_v57 = vmul.f32 %v2500_v33, %v1810_v10 }
 0x7ac   :  { %2404 = vmatprep.subr.bf16.mxu1 %v2505_v16  ;;  %v1835_v26 = vmul.f32 %v2502_v38, %v1811_v0 }
 0x7ae   :  { %v2405_v27 = vpack.c.bf16 %v1835_v26, %v1834_v57 }
 0x7b0   :  { %2406 = vmatpush3.bf16.msra.mxu1 %v2405_v27 }
 0x7b3   :  { %2291 = vmatmul.mubr.msk.f32.vlgmr.msra.gmra.mrb[20].mxu1 %vm342_vm10, %v557_v28 }
 0x886   :  { %v1905_v29 = vpop.f32.mrb[20].mxu1 }
 0x887   :  { %1909 = vst [vmem:[%s3030_s8] sm:$0xff] %v1905_v29  ;;  %v2292_v34 = vpop.f32.mrb[21].mxu1 }

</bundles_post_ra>
